<compile_context>
chip_gen: v5e
topology: v5e:2x2
jax: 0.10.0
libtpu: 0.0.40
codegen_flags: <defaults>
</compile_context>

<pallas_src>
import functools

import jax
import jax.numpy as jnp
from jax.experimental import pallas as pl
from jax.experimental.pallas import tpu as pltpu

L2_EPS = 1e-10   # eps inside L2Norm's sqrt
SI_EPS = 1e-06   # eps added to squared diff before the mean (applied in wrapper)

# Rough upper bound on simultaneously-live f32 intermediates per tile element
# (upcast x, upcast y, x*inv, y*inv, diff/err, headroom) used for VMEM budgeting.
_INTERMEDIATE_F32_SLABS = 6


def _super_id_loss_kernel(x_ref, y_ref, o_ref, *, tm, n_rows, steps_per_group,
                          use_mxu_rowsum):
    g = pl.program_id(0)
    s = pl.program_id(1)

    # Per-group accumulator (the VMEM-resident output block) init on first step.
    @pl.when(s == 0)
    def _():
        o_ref[...] = jnp.zeros_like(o_ref)

    x = x_ref[...].astype(jnp.float32)
    y = y_ref[...].astype(jnp.float32)
    d = x.shape[-1]

    # Row-wise sum of squares over the lane axis D.
    if use_mxu_rowsum:
        # MXU path (v7x option): (tm, D) @ (D, D) ones -> lane-replicated row
        # sums, so rsqrt runs on dense vregs and the multiply below needs no
        # lane broadcast. MXU is otherwise idle in this kernel.
        ones = jnp.ones((d, d), jnp.float32)
        ssx = jnp.dot(x * x, ones, preferred_element_type=jnp.float32)
        ssy = jnp.dot(y * y, ones, preferred_element_type=jnp.float32)
    else:
        ssx = jnp.sum(x * x, axis=1, keepdims=True)
        ssy = jnp.sum(y * y, axis=1, keepdims=True)

    # rsqrt + mul instead of sqrt + divide (single EUP op per operand).
    inv_x = jax.lax.rsqrt(ssx + L2_EPS)
    inv_y = jax.lax.rsqrt(ssy + L2_EPS)
    diff = x * inv_x - y * inv_y
    err = diff * diff                         # SI_EPS added once in the wrapper

    step = g * steps_per_group + s
    block_end = (step + 1) * tm

    # Fast path: fully in-range interior block -> no iota/compare/select.
    @pl.when(block_end <= n_rows)
    def _():
        o_ref[0] += jnp.sum(err.reshape(tm // 8, 8, d), axis=0)

    # Slow path: tail block and clamped duplicate blocks. Keep this a *select*
    # (jnp.where), never a mask-multiply, so NaN/Inf in padded HBM rows cannot
    # propagate into the accumulator.
    @pl.when(block_end > n_rows)
    def _():
        row_ids = step * tm + jax.lax.broadcasted_iota(jnp.int32, (tm, 1), 0)
        masked = jnp.where(row_ids < n_rows, err, 0.0)
        o_ref[0] += jnp.sum(masked.reshape(tm // 8, 8, d), axis=0)


def _vmem_budget_bytes():
    """Scoped-VMEM budget with headroom, derived from the actual chip."""
    cap = 64 * 1024 * 1024            # conservative fallback (v7x-sized)
    try:
        cap = int(pltpu.get_tpu_info().vmem_capacity_bytes)
    except Exception:
        pass
    budget = min(cap - 16 * 1024 * 1024, (cap * 3) // 4)
    return max(32 * 1024 * 1024, budget)


def _num_tensorcores():
    """Best-effort TensorCore count (2 on v7x/megacore, 1 on v5e/v6e)."""
    try:
        info = pltpu.get_tpu_info()
        for name in ("num_cores", "num_tensorcores", "tensorcore_count",
                     "core_count"):
            v = getattr(info, name, None)
            if v:
                return int(v)
    except Exception:
        pass
    try:
        return int(getattr(jax.devices()[0], "num_cores", 1) or 1)
    except Exception:
        return 1


def _choose_tm(n_rows, d, itemsize, sublane, vmem_budget,
               target_tile_bytes=4 * 1024 * 1024):
    """Largest row tile with ~4 MiB per input per pipeline buffer that also
    fits (input double-buffers + f32 intermediates) inside the VMEM budget."""
    tm = target_tile_bytes // (d * itemsize)
    bytes_per_row = d * (2 * 2 * itemsize + _INTERMEDIATE_F32_SLABS * 4)
    tm = min(tm, vmem_budget // bytes_per_row)
    tm = (int(tm) // sublane) * sublane
    tm = min(tm, pl.cdiv(n_rows, sublane) * sublane)   # never bigger than padded N
    return max(tm, sublane)


def super_identity_loss(x, y, *, tm=None, num_groups=None, use_mxu_rowsum=False):
    """Pallas implementation of SuperIdentityLoss.forward for 2-D inputs [N, D]."""
    assert x.shape == y.shape and x.ndim == 2
    n, d = x.shape
    x_item = jnp.dtype(x.dtype).itemsize
    y_item = jnp.dtype(y.dtype).itemsize
    itemsize = max(x_item, y_item)
    # Packed-sublane multiple for the narrowest input dtype: 8 f32, 16 bf16, 32 int8/fp8.
    sublane = max(8, 32 // min(x_item, y_item))

    vmem_budget = _vmem_budget_bytes()
    if tm is None:
        tm = _choose_tm(n, d, itemsize, sublane, vmem_budget)
    assert tm % sublane == 0, (
        f"row tile {tm} must be a multiple of the packed-sublane tile {sublane}")

    total_blocks = pl.cdiv(n, tm)
    if num_groups is None:
        # Split across TensorCores only when there is enough work; otherwise the
        # clamped duplicate blocks just waste full-tile HBM reads.
        num_groups = _num_tensorcores() if total_blocks >= 8 else 1
    num_groups = max(1, min(num_groups, total_blocks))
    steps_per_group = pl.cdiv(total_blocks, num_groups)

    def in_map(g, s):
        # Clamp so padded (duplicate) grid steps index a valid block; their
        # contribution is zeroed by the row mask inside the kernel.
        return (jnp.minimum(g * steps_per_group + s, total_blocks - 1), 0)

    kernel = functools.partial(
        _super_id_loss_kernel, tm=tm, n_rows=n,
        steps_per_group=steps_per_group, use_mxu_rowsum=use_mxu_rowsum)

    cost = pl.CostEstimate(
        flops=int(8 * n * d + (2 * n * d * d if use_mxu_rowsum else 0)),
        transcendentals=int(2 * n),
        bytes_accessed=int(n * d * (x_item + y_item) + num_groups * 8 * d * 4),
    )

    partial_sums = pl.pallas_call(
        kernel,
        out_shape=jax.ShapeDtypeStruct((num_groups, 8, d), jnp.float32),
        grid_spec=pltpu.PrefetchScalarGridSpec(
            num_scalar_prefetch=0,
            grid=(num_groups, steps_per_group),
            in_specs=[
                pl.BlockSpec((tm, d), in_map),
                pl.BlockSpec((tm, d), in_map),
            ],
            out_specs=pl.BlockSpec((1, 8, d), lambda g, s: (g, 0, 0)),
        ),
        compiler_params=pltpu.CompilerParams(
            dimension_semantics=("parallel", "arbitrary"),
            vmem_limit_bytes=int(vmem_budget),
        ),
        cost_estimate=cost,
    )(x, y)

    # Final reduce, mean, and the hoisted +eps in plain JAX (tiny; combines both
    # TensorCores' partial sums here instead of inside the hot loop).
    return jnp.sum(partial_sums) / float(n * d) + SI_EPS


def _reference(x, y):
    x = x.astype(jnp.float32)
    y = y.astype(jnp.float32)
    nx = x / jnp.sqrt(jnp.sum(x * x, axis=1, keepdims=True) + L2_EPS)
    ny = y / jnp.sqrt(jnp.sum(y * y, axis=1, keepdims=True) + L2_EPS)
    diff = nx - ny
    return jnp.mean(diff * diff + SI_EPS)


if __name__ == "__main__":
    key = jax.random.PRNGKey(0)
    kx, ky = jax.random.split(key)
    N, D = 300, 128   # small feature-embedding batch (non-multiple-of-8 rows)
    x = jax.random.normal(kx, (N, D), dtype=jnp.float32)
    y = jax.random.normal(ky, (N, D), dtype=jnp.float32)

    ref = jax.block_until_ready(_reference(x, y))

    # (1) Default (large, auto-chosen) row tile: single grid step, masked tail.
    loss = jax.block_until_ready(super_identity_loss(x, y))
    assert jnp.allclose(loss, ref, rtol=1e-5, atol=1e-6), (loss, ref)

    # (2) Forced small tile: multi-step grid, unmasked interior fast path plus
    #     masked tail block.
    loss2 = jax.block_until_ready(super_identity_loss(x, y, tm=64))
    assert jnp.allclose(loss2, ref, rtol=1e-5, atol=1e-6), (loss2, ref)

    # (3) Forced 2 row-groups: exercises the 'parallel' group axis and the
    #     clamped duplicate block (fully masked to zero).
    loss3 = jax.block_until_ready(super_identity_loss(x, y, tm=64, num_groups=2))
    assert jnp.allclose(loss3, ref, rtol=1e-5, atol=1e-6), (loss3, ref)

    # (4) bf16 inputs (half HBM traffic); accumulation stays f32 in-kernel.
    xb, yb = x.astype(jnp.bfloat16), y.astype(jnp.bfloat16)
    refb = jax.block_until_ready(
        _reference(xb.astype(jnp.float32), yb.astype(jnp.float32)))
    loss4 = jax.block_until_ready(super_identity_loss(xb, yb, tm=64))
    assert jnp.allclose(loss4, refb, rtol=1e-4, atol=1e-5), (loss4, refb)

    # (5) Optional MXU row-sum path (v7x lever): looser tolerance since the MXU
    #     dot may use reduced-precision passes at default matmul precision.
    loss5 = jax.block_until_ready(
        super_identity_loss(x, y, tm=64, use_mxu_rowsum=True))
    assert jnp.allclose(loss5, ref, rtol=5e-3, atol=1e-5), (loss5, ref)

    print("KERNEL_OK")
</pallas_src>

<mosaic_0001>
module attributes {stable_mosaic.version = 11 : i64} {
  func.func @_super_id_loss_kernel(%arg0: i32, %arg1: i32, %arg2: memref<304x128xf32, #tpu.memory_space<vmem>>, %arg3: memref<304x128xf32, #tpu.memory_space<vmem>>, %arg4: memref<1x8x128xf32, #tpu.memory_space<vmem>>) attributes {dimension_semantics = [#tpu.dimension_semantics<parallel>, #tpu.dimension_semantics<arbitrary>], iteration_bounds = array<i64: 1, 1>, scalar_prefetch = 0 : i64, scratch_operands = 0 : i64, tpu.core_type = #tpu.core_type<tc>, window_params = [{transform_indices = @transform_0, window_bounds = array<i64: 304, 128>}, {transform_indices = @transform_1, window_bounds = array<i64: 304, 128>}, {transform_indices = @transform_2, window_bounds = array<i64: 1, 8, 128>}]} {
    %c0_i32 = arith.constant 0 : i32
    %0 = arith.cmpi eq, %arg1, %c0_i32 : i32
    %1 = arith.extui %0 : i1 to i32
    %c0_i32_0 = arith.constant 0 : i32
    %2 = arith.cmpi ne, %1, %c0_i32_0 : i32
    scf.if %2 {
      %cst_11 = arith.constant 0.000000e+00 : f32
      %33 = vector.broadcast %cst_11 : f32 to vector<1x8x128xf32>
      %c0_12 = arith.constant 0 : index
      %c0_13 = arith.constant 0 : index
      %c0_14 = arith.constant 0 : index
      %34 = vector.load %arg4[%c0_12, %c0_13, %c0_14] : memref<1x8x128xf32, #tpu.memory_space<vmem>>, vector<1x8x128xf32>
      tpu.vector_store %arg4[%c0_12, %c0_13, %c0_14], %33 {strides = array<i32>} : memref<1x8x128xf32, #tpu.memory_space<vmem>>, vector<1x8x128xf32>,
    } else {
    }
    %c0 = arith.constant 0 : index
    %c0_1 = arith.constant 0 : index
    %3 = vector.load %arg2[%c0, %c0_1] : memref<304x128xf32, #tpu.memory_space<vmem>>, vector<304x128xf32>
    %c0_2 = arith.constant 0 : index
    %c0_3 = arith.constant 0 : index
    %4 = vector.load %arg3[%c0_2, %c0_3] : memref<304x128xf32, #tpu.memory_space<vmem>>, vector<304x128xf32>
    %5 = arith.mulf %3, %3 : vector<304x128xf32>
    %cst = arith.constant dense<0.000000e+00> : vector<304xf32>
    %6 = vector.multi_reduction <add>, %5, %cst [1] : vector<304x128xf32> to vector<304xf32>
    %7 = vector.shape_cast %6 : vector<304xf32> to vector<304x1xf32>
    %8 = arith.mulf %4, %4 : vector<304x128xf32>
    %cst_4 = arith.constant dense<0.000000e+00> : vector<304xf32>
    %9 = vector.multi_reduction <add>, %8, %cst_4 [1] : vector<304x128xf32> to vector<304xf32>
    %10 = vector.shape_cast %9 : vector<304xf32> to vector<304x1xf32>
    %cst_5 = arith.constant 1.000000e-10 : f32
    %11 = vector.broadcast %cst_5 : f32 to vector<304x1xf32>
    %12 = arith.addf %7, %11 : vector<304x1xf32>
    %13 = math.rsqrt %12 : vector<304x1xf32>
    %cst_6 = arith.constant 1.000000e-10 : f32
    %14 = vector.broadcast %cst_6 : f32 to vector<304x1xf32>
    %15 = arith.addf %10, %14 : vector<304x1xf32>
    %16 = math.rsqrt %15 : vector<304x1xf32>
    %17 = vector.broadcast %13 : vector<304x1xf32> to vector<304x128xf32>
    %18 = arith.mulf %3, %17 : vector<304x128xf32>
    %19 = vector.broadcast %16 : vector<304x1xf32> to vector<304x128xf32>
    %20 = arith.mulf %4, %19 : vector<304x128xf32>
    %21 = arith.subf %18, %20 : vector<304x128xf32>
    %22 = arith.mulf %21, %21 : vector<304x128xf32>
    %c1_i32 = arith.constant 1 : i32
    %23 = arith.muli %arg0, %c1_i32 : i32
    %24 = arith.addi %23, %arg1 : i32
    %c1_i32_7 = arith.constant 1 : i32
    %25 = arith.addi %24, %c1_i32_7 : i32
    %c304_i32 = arith.constant 304 : i32
    %26 = arith.muli %25, %c304_i32 : i32
    %c300_i32 = arith.constant 300 : i32
    %27 = arith.cmpi sle, %26, %c300_i32 : i32
    %28 = arith.extui %27 : i1 to i32
    %c0_i32_8 = arith.constant 0 : i32
    %29 = arith.cmpi ne, %28, %c0_i32_8 : i32
    scf.if %29 {
      %c0_11 = arith.constant 0 : index
      %c0_12 = arith.constant 0 : index
      %c0_13 = arith.constant 0 : index
      %33 = vector.load %arg4[%c0_11, %c0_12, %c0_13] : memref<1x8x128xf32, #tpu.memory_space<vmem>>, vector<1x8x128xf32>
      %34 = vector.shape_cast %33 : vector<1x8x128xf32> to vector<8x128xf32>
      %35 = vector.shape_cast %22 : vector<304x128xf32> to vector<38x8x128xf32>
      %cst_14 = arith.constant dense<0.000000e+00> : vector<8x128xf32>
      %36 = vector.multi_reduction <add>, %35, %cst_14 [0] : vector<38x8x128xf32> to vector<8x128xf32>
      %37 = arith.addf %34, %36 : vector<8x128xf32>
      %c0_15 = arith.constant 0 : index
      %c0_16 = arith.constant 0 : index
      %c0_17 = arith.constant 0 : index
      %38 = vector.load %arg4[%c0_15, %c0_16, %c0_17] : memref<1x8x128xf32, #tpu.memory_space<vmem>>, vector<1x8x128xf32>
      %39 = vector.shape_cast %38 : vector<1x8x128xf32> to vector<8x128xf32>
      %40 = vector.shape_cast %37 : vector<8x128xf32> to vector<1x8x128xf32>
      tpu.vector_store %arg4[%c0_15, %c0_16, %c0_17], %40 {strides = array<i32>} : memref<1x8x128xf32, #tpu.memory_space<vmem>>, vector<1x8x128xf32>,
    } else {
    }
    %c300_i32_9 = arith.constant 300 : i32
    %30 = arith.cmpi sgt, %26, %c300_i32_9 : i32
    %31 = arith.extui %30 : i1 to i32
    %c0_i32_10 = arith.constant 0 : i32
    %32 = arith.cmpi ne, %31, %c0_i32_10 : i32
    scf.if %32 {
      %c304_i32_11 = arith.constant 304 : i32
      %33 = arith.muli %24, %c304_i32_11 : i32
      %34 = tpu.iota {dimensions = array<i32: 0>} : vector<304x1xi32>
      %35 = vector.broadcast %33 : i32 to vector<304x1xi32>
      %36 = arith.addi %35, %34 : vector<304x1xi32>
      %c300_i32_12 = arith.constant 300 : i32
      %37 = vector.broadcast %c300_i32_12 : i32 to vector<304x1xi32>
      %38 = arith.cmpi slt, %36, %37 : vector<304x1xi32>
      %cst_13 = arith.constant 0.000000e+00 : f32
      %39 = vector.shape_cast %38 : vector<304x1xi1> to vector<304x1xi1>
      %40 = vector.broadcast %39 : vector<304x1xi1> to vector<304x128xi1>
      %41 = vector.broadcast %cst_13 : f32 to vector<304x128xf32>
      %42 = arith.select %40, %22, %41 : vector<304x128xi1>, vector<304x128xf32>
      %c0_14 = arith.constant 0 : index
      %c0_15 = arith.constant 0 : index
      %c0_16 = arith.constant 0 : index
      %43 = vector.load %arg4[%c0_14, %c0_15, %c0_16] : memref<1x8x128xf32, #tpu.memory_space<vmem>>, vector<1x8x128xf32>
      %44 = vector.shape_cast %43 : vector<1x8x128xf32> to vector<8x128xf32>
      %45 = vector.shape_cast %42 : vector<304x128xf32> to vector<38x8x128xf32>
      %cst_17 = arith.constant dense<0.000000e+00> : vector<8x128xf32>
      %46 = vector.multi_reduction <add>, %45, %cst_17 [0] : vector<38x8x128xf32> to vector<8x128xf32>
      %47 = arith.addf %44, %46 : vector<8x128xf32>
      %c0_18 = arith.constant 0 : index
      %c0_19 = arith.constant 0 : index
      %c0_20 = arith.constant 0 : index
      %48 = vector.load %arg4[%c0_18, %c0_19, %c0_20] : memref<1x8x128xf32, #tpu.memory_space<vmem>>, vector<1x8x128xf32>
      %49 = vector.shape_cast %48 : vector<1x8x128xf32> to vector<8x128xf32>
      %50 = vector.shape_cast %47 : vector<8x128xf32> to vector<1x8x128xf32>
      tpu.vector_store %arg4[%c0_18, %c0_19, %c0_20], %50 {strides = array<i32>} : memref<1x8x128xf32, #tpu.memory_space<vmem>>, vector<1x8x128xf32>,
    } else {
    }
    return
  }
  func.func @transform_0(%arg0: i32, %arg1: i32) -> (i32, i32) {
    %c1_i32 = arith.constant 1 : i32
    %0 = arith.muli %arg0, %c1_i32 : i32
    %1 = arith.addi %0, %arg1 : i32
    %c0_i32 = arith.constant 0 : i32
    %2 = arith.minsi %1, %c0_i32 : i32
    %c0_i32_0 = arith.constant 0 : i32
    %c0_i32_1 = arith.constant 0 : i32
    return %2, %c0_i32_0 : i32, i32
  }
  func.func @transform_1(%arg0: i32, %arg1: i32) -> (i32, i32) {
    %c1_i32 = arith.constant 1 : i32
    %0 = arith.muli %arg0, %c1_i32 : i32
    %1 = arith.addi %0, %arg1 : i32
    %c0_i32 = arith.constant 0 : i32
    %2 = arith.minsi %1, %c0_i32 : i32
    %c0_i32_0 = arith.constant 0 : i32
    %c0_i32_1 = arith.constant 0 : i32
    return %2, %c0_i32_0 : i32, i32
  }
  func.func @transform_2(%arg0: i32, %arg1: i32) -> (i32, i32, i32) {
    %c0_i32 = arith.constant 0 : i32
    %c0_i32_0 = arith.constant 0 : i32
    %c0_i32_1 = arith.constant 0 : i32
    return %arg0, %c0_i32, %c0_i32_0 : i32, i32, i32
  }
}

</mosaic_0001>

<bundles_post_ra>
// kernel: tpu_custom_call.1
= control target key start
LH: loop header
LB: loop body
LE: loop exit
PB: predicated region body
PF: predicated region fallthrough
CT: control target
= control target key end

     0   :  { %7 = vsyncpa [#allocation3], 0  ;;  %s3791_s0 = inlined_call_operand.hbm [shape: f32[300,128], index: 0, kind: input, shape index: {}]   ;;  %s3792_s1 = inlined_call_operand.hbm [shape: f32[300,128], index: 1, kind: input, shape index: {}]   ;;  %s3793_s2 = inlined_call_operand.hbm [shape: f32[1,8,128], index: 2, kind: output, shape index: {}]  }
   0x1   :  { %8 = vsyncpa [#allocation6], 0 }
   0x2   :  { %9 = vsyncpa [#allocation4], 0  ;;  %s20_s11 = sshll.u32 %s3791_s0, 4  ;;  %s1998_s12 = smov [#allocation2]   ;;  %s21_s11 = int_to_ptr.hbm [resolvable:$true] %s20_s11 }
   0x3   :  { %s22_s13 = sshll.u32 %s1998_s12, 4  ;;  %s39_s16 = sshll.u32 %s3792_s1, 4  ;;  %s23_s13 = int_to_ptr.vmem [resolvable:$true] %s22_s13  ;;  %s40_s16 = int_to_ptr.hbm [resolvable:$true] %s39_s16 }
   0x4   :  { %s1999_s17 = smov 128   ;;  %s2000_s18 = smov 8  }
   0x5   :  { %28 = dma.hbm_to_vmem [thread:$0]  %s21_s11, 4864, %s23_s13, [#allocation3], %s1999_s17, %s1999_s17, %s2000_s18  }
   0x6   :  { %s2001_s19 = smov [#allocation5]  }
   0x7   :  { %s41_s20 = sshll.u32 %s2001_s19, 4  ;;  %s42_s20 = int_to_ptr.vmem [resolvable:$true] %s41_s20 }
   0x8   :  { %47 = dma.hbm_to_vmem [thread:$0]  %s40_s16, 4864, %s42_s20, [#allocation6], %s1999_s17, %s1999_s17, %s2000_s18  }
   0x9   :  { %1992 = dma.done.wait [#allocation3], 4864  }
   0xa   :  { %1993 = vsyncadd [#allocation3], 4294962432 }
   0xb   :  { %1994 = dma.done.wait [#allocation6], 4864  }
   0xc   :  { %1995 = vsyncadd [#allocation6], 4294962432  ;;  %v2024_v0 = vld [vmem:[#allocation2 + $0x20] sm:$0xff]  ;;  %v2026_v1 = vld [vmem:[#allocation2 + $0x10] sm:$0xff]  ;;  %s2002_s0 = smov [#allocation7]   ;;  %s1690_s23 = sshll.u32 %s3793_s2, 4  ;;  %s1691_s23 = int_to_ptr.hbm [resolvable:$true] %s1690_s23 }
   0xd   :  { %v2028_v2 = vld [vmem:[#allocation2] sm:$0xff]  ;;  %v149_v3 = vmul.f32 %v2024_v0, %v2024_v0  ;;  %v147_v4 = vmul.f32 %v2026_v1, %v2026_v1  ;;  %v2036_v6 = vld [vmem:[#allocation2 + $0x28] sm:$0xff]  ;;  %v2038_v7 = vld [vmem:[#allocation2 + $0x18] sm:$0xff]  ;;  %s1688_s1 = sshll.u32 %s2002_s0, 4  ;;  %s1689_s1 = int_to_ptr.vmem [resolvable:$true] %s1688_s1 }
   0xe   :  { %v145_v5 = vmul.f32 %v2028_v2, %v2028_v2  ;;  %v2040_v8 = vld [vmem:[#allocation2 + $0x8] sm:$0xff]  ;;  %v150_v9 = vmul.f32 %v2036_v6, %v2036_v6  ;;  %v148_v10 = vmul.f32 %v2038_v7, %v2038_v7  ;;  %v2048_v12 = vld [vmem:[#allocation2 + $0x40] sm:$0xff]  ;;  %v2050_v13 = vld [vmem:[#allocation2 + $0x38] sm:$0xff] }
   0xf   :  { %191 = vadd.xlane.f32.xlu2 %v149_v3  ;;  %187 = vadd.xlane.f32.xlu1 %v147_v4  ;;  %v146_v11 = vmul.f32 %v2040_v8, %v2040_v8  ;;  %v2052_v14 = vld [vmem:[#allocation2 + $0x30] sm:$0xff]  ;;  %v153_v15 = vmul.f32 %v2048_v12, %v2048_v12  ;;  %v152_v16 = vmul.f32 %v2050_v13, %v2050_v13  ;;  %v2060_v18 = vld [vmem:[#allocation2 + $0x58] sm:$0xff]  ;;  %v2064_v20 = vld [vmem:[#allocation2 + $0x48] sm:$0xff] }
  0x10   :  { %183 = vadd.xlane.f32.xlu0 %v145_v5  ;;  %v151_v17 = vmul.f32 %v2052_v14, %v2052_v14  ;;  %v2062_v19 = vld [vmem:[#allocation2 + $0x50] sm:$0xff]  ;;  %v156_v21 = vmul.f32 %v2060_v18, %v2060_v18  ;;  %v154_v23 = vmul.f32 %v2064_v20, %v2064_v20  ;;  %v2074_v25 = vld [vmem:[#allocation2 + $0x68] sm:$0xff]  ;;  %v2076_v26 = vld [vmem:[#allocation2 + $0x60] sm:$0xff] }
  0x11   :  { %v155_v22 = vmul.f32 %v2062_v19, %v2062_v19  ;;  %v2072_v24 = vld [vmem:[#allocation2 + $0x70] sm:$0xff]  ;;  %v158_v28 = vmul.f32 %v2074_v25, %v2074_v25  ;;  %v157_v29 = vmul.f32 %v2076_v26, %v2076_v26  ;;  %v2084_v30 = vld [vmem:[#allocation2 + $0x88] sm:$0xff]  ;;  %v2086_v31 = vld [vmem:[#allocation2 + $0x80] sm:$0xff] }
  0x12   :  { %v159_v27 = vmul.f32 %v2072_v24, %v2072_v24  ;;  %v2088_v32 = vld [vmem:[#allocation2 + $0x78] sm:$0xff]  ;;  %v162_v33 = vmul.f32 %v2084_v30, %v2084_v30  ;;  %v161_v34 = vmul.f32 %v2086_v31, %v2086_v31  ;;  %v2096_v36 = vld [vmem:[#allocation2 + $0xa0] sm:$0xff]  ;;  %v87_v38 = vld [vmem:[#allocation2 + $0x90] sm:$0xff] }
  0x13   :  { %v160_v35 = vmul.f32 %v2088_v32, %v2088_v32  ;;  %v88_v37 = vld [vmem:[#allocation2 + $0x98] sm:$0xff]  ;;  %v165_v39 = vmul.f32 %v2096_v36, %v2096_v36  ;;  %v163_v41 = vmul.f32 %v87_v38, %v87_v38  ;;  %v91_v43 = vld [vmem:[#allocation2 + $0xb0] sm:$0xff]  ;;  %v90_v44 = vld [vmem:[#allocation2 + $0xa8] sm:$0xff] }
  0x14   :  { %v164_v40 = vmul.f32 %v88_v37, %v88_v37  ;;  %v92_v42 = vld [vmem:[#allocation2 + $0xb8] sm:$0xff]  ;;  %v167_v46 = vmul.f32 %v91_v43, %v91_v43  ;;  %v166_v47 = vmul.f32 %v90_v44, %v90_v44  ;;  %v95_v48 = vld [vmem:[#allocation2 + $0xd0] sm:$0xff]  ;;  %v94_v49 = vld [vmem:[#allocation2 + $0xc8] sm:$0xff] }
  0x15   :  { %v168_v45 = vmul.f32 %v92_v42, %v92_v42  ;;  %v93_v50 = vld [vmem:[#allocation2 + $0xc0] sm:$0xff]  ;;  %v171_v51 = vmul.f32 %v95_v48, %v95_v48  ;;  %v170_v52 = vmul.f32 %v94_v49, %v94_v49  ;;  %v107_v54 = vld [vmem:[#allocation5] sm:$0xff]  ;;  %v96_v56 = vld [vmem:[#allocation2 + $0xd8] sm:$0xff] }
  0x16   :  { %v169_v53 = vmul.f32 %v93_v50, %v93_v50  ;;  %v97_v55 = vld [vmem:[#allocation2 + $0xe0] sm:$0xff]  ;;  %v259_v57 = vmul.f32 %v107_v54, %v107_v54  ;;  %v172_v59 = vmul.f32 %v96_v56, %v96_v56  ;;  %v110_v60 = vld [vmem:[#allocation5 + $0x18] sm:$0xff]  ;;  %v108_v62 = vld [vmem:[#allocation5 + $0x8] sm:$0xff] }
  0x17   :  { %193 = vadd.xlane.f32.xlu2 %v150_v9  ;;  %189 = vadd.xlane.f32.xlu1 %v148_v10  ;;  %v173_v58 = vmul.f32 %v97_v55, %v97_v55  ;;  %v109_v61 = vld [vmem:[#allocation5 + $0x10] sm:$0xff]  ;;  %v262_v63 = vmul.f32 %v110_v60, %v110_v60  ;;  %v260_v4 = vmul.f32 %v108_v62, %v108_v62  ;;  %v112_v9 = vld [vmem:[#allocation5 + $0x28] sm:$0xff]  ;;  %v111_v10 = vld [vmem:[#allocation5 + $0x20] sm:$0xff] }
  0x18   :  { %185 = vadd.xlane.f32.xlu0 %v146_v11  ;;  %v261_v3 = vmul.f32 %v109_v61, %v109_v61  ;;  %v113_v5 = vld [vmem:[#allocation5 + $0x30] sm:$0xff] }
  0x19   :  { %v265_v11 = vmul.f32 %v113_v5, %v113_v5 }
  0x1f   :  { %199 = vadd.xlane.f32.xlu2 %v153_v15  ;;  %197 = vadd.xlane.f32.xlu1 %v152_v16  ;;  %v264_v15 = vmul.f32 %v112_v9, %v112_v9  ;;  %v263_v16 = vmul.f32 %v111_v10, %v111_v10 }
  0x20   :  { %195 = vadd.xlane.f32.xlu0 %v151_v17  ;;  %v116_v17 = vld [vmem:[#allocation5 + $0x48] sm:$0xff] }
  0x27   :  { %205 = vadd.xlane.f32.xlu2 %v156_v21  ;;  %203 = vadd.xlane.f32.xlu1 %v155_v22  ;;  %v115_v21 = vld [vmem:[#allocation5 + $0x40] sm:$0xff]  ;;  %v114_v22 = vld [vmem:[#allocation5 + $0x38] sm:$0xff] }
  0x28   :  { %201 = vadd.xlane.f32.xlu0 %v154_v23  ;;  %v268_v23 = vmul.f32 %v116_v17, %v116_v17 }
  0x2f   :  { %211 = vadd.xlane.f32.xlu2 %v159_v27  ;;  %209 = vadd.xlane.f32.xlu1 %v158_v28  ;;  %v267_v27 = vmul.f32 %v115_v21, %v115_v21  ;;  %v266_v28 = vmul.f32 %v114_v22, %v114_v22 }
  0x30   :  { %207 = vadd.xlane.f32.xlu0 %v157_v29  ;;  %v119_v29 = vld [vmem:[#allocation5 + $0x60] sm:$0xff] }
  0x37   :  { %217 = vadd.xlane.f32.xlu2 %v162_v33  ;;  %215 = vadd.xlane.f32.xlu1 %v161_v34  ;;  %v118_v33 = vld [vmem:[#allocation5 + $0x58] sm:$0xff]  ;;  %v117_v34 = vld [vmem:[#allocation5 + $0x50] sm:$0xff] }
  0x38   :  { %213 = vadd.xlane.f32.xlu0 %v160_v35  ;;  %v271_v35 = vmul.f32 %v119_v29, %v119_v29  ;;  %v270_v37 = vmul.f32 %v118_v33, %v118_v33  ;;  %v269_v38 = vmul.f32 %v117_v34, %v117_v34  ;;  %v129_v33 = vld [vmem:[#allocation5 + $0xb0] sm:$0xff] }
  0x3f   :  { %223 = vadd.xlane.f32.xlu2 %v165_v39  ;;  %221 = vadd.xlane.f32.xlu1 %v164_v40  ;;  %v122_v39 = vld [vmem:[#allocation5 + $0x78] sm:$0xff]  ;;  %v121_v40 = vld [vmem:[#allocation5 + $0x70] sm:$0xff] }
  0x40   :  { %219 = vadd.xlane.f32.xlu0 %v163_v41  ;;  %v120_v41 = vld [vmem:[#allocation5 + $0x68] sm:$0xff]  ;;  %v274_v42 = vmul.f32 %v122_v39, %v122_v39  ;;  %v273_v43 = vmul.f32 %v121_v40, %v121_v40 }
  0x41   :  { %v272_v44 = vmul.f32 %v120_v41, %v120_v41 }
  0x47   :  { %229 = vadd.xlane.f32.xlu2 %v168_v45  ;;  %227 = vadd.xlane.f32.xlu1 %v167_v46  ;;  %v125_v45 = vld [vmem:[#allocation5 + $0x90] sm:$0xff]  ;;  %v124_v46 = vld [vmem:[#allocation5 + $0x88] sm:$0xff] }
  0x48   :  { %225 = vadd.xlane.f32.xlu0 %v166_v47  ;;  %v123_v47 = vld [vmem:[#allocation5 + $0x80] sm:$0xff]  ;;  %v276_v54 = vmul.f32 %v124_v46, %v124_v46 }
  0x49   :  { %v275_v56 = vmul.f32 %v123_v47, %v123_v47 }
  0x4f   :  { %235 = vadd.xlane.f32.xlu2 %v171_v51  ;;  %233 = vadd.xlane.f32.xlu1 %v170_v52 }
  0x50   :  { %231 = vadd.xlane.f32.xlu0 %v169_v53  ;;  %v277_v53 = vmul.f32 %v125_v45, %v125_v45  ;;  %v281_v45 = vmul.f32 %v129_v33, %v129_v33 }
  0x57   :  { %297 = vadd.xlane.f32.xlu2 %v259_v57  ;;  %239 = vadd.xlane.f32.xlu1 %v173_v58  ;;  %v128_v57 = vld [vmem:[#allocation5 + $0xa8] sm:$0xff]  ;;  %v127_v58 = vld [vmem:[#allocation5 + $0xa0] sm:$0xff] }
  0x58   :  { %237 = vadd.xlane.f32.xlu0 %v172_v59  ;;  %v126_v59 = vld [vmem:[#allocation5 + $0x98] sm:$0xff]  ;;  %v280_v5 = vmul.f32 %v128_v57, %v128_v57  ;;  %v279_v9 = vmul.f32 %v127_v58, %v127_v58  ;;  %v133_v57 = vld [vmem:[#allocation5 + $0xd0] sm:$0xff] }
  0x5f   :  { %303 = vadd.xlane.f32.xlu2 %v262_v63  ;;  %301 = vadd.xlane.f32.xlu1 %v261_v3 }
  0x60   :  { %299 = vadd.xlane.f32.xlu0 %v260_v4 }
  0x67   :  { %309 = vadd.xlane.f32.xlu2 %v265_v11  ;;  %307 = vadd.xlane.f32.xlu1 %v264_v15 }
  0x68   :  { %305 = vadd.xlane.f32.xlu0 %v263_v16  ;;  %v278_v16 = vmul.f32 %v126_v59, %v126_v59 }
  0x6f   :  { %315 = vadd.xlane.f32.xlu2 %v268_v23  ;;  %313 = vadd.xlane.f32.xlu1 %v267_v27  ;;  %v131_v27 = vld [vmem:[#allocation5 + $0xc0] sm:$0xff] }
  0x70   :  { %311 = vadd.xlane.f32.xlu0 %v266_v28  ;;  %v130_v28 = vld [vmem:[#allocation5 + $0xb8] sm:$0xff] }
  0x77   :  { %321 = vadd.xlane.f32.xlu2 %v271_v35  ;;  %319 = vadd.xlane.f32.xlu1 %v270_v37 }
  0x78   :  { %317 = vadd.xlane.f32.xlu0 %v269_v38 }
  0x7f   :  { %327 = vadd.xlane.f32.xlu2 %v274_v42  ;;  %325 = vadd.xlane.f32.xlu1 %v273_v43  ;;  %v283_v42 = vmul.f32 %v131_v27, %v131_v27  ;;  %v282_v43 = vmul.f32 %v130_v28, %v130_v28 }
  0x80   :  { %323 = vadd.xlane.f32.xlu0 %v272_v44 }
  0x82   :  { %v192_v48 = vpop.xlane.xlu2 %191  ;;  %v188_v49 = vpop.xlane.xlu1 %187 }
  0x83   :  { %v2100_v50 = vadd.f32 1e-10, %v192_v48  ;;  %v2102_v51 = vadd.f32 1e-10, %v188_v49  ;;  %v184_v52 = vpop.xlane.xlu0 %183 }
  0x84   :  { %v2104_v55 = vadd.f32 1e-10, %v184_v52  ;;  %v134_v52 = vld [vmem:[#allocation5 + $0xd8] sm:$0xff] }
  0x85   :  { %1711 = vrsqrt.f32 %v2100_v50  ;;  %vm457_vm0 = vweird.f32 %v2100_v50  ;;  %vm437_vm1 = vweird.f32 %v2102_v51  ;;  %v286_v59 = vmul.f32 %v134_v52, %v134_v52 }
  0x86   :  { %1713 = vrsqrt.f32 %v2102_v51  ;;  %vm417_vm2 = vweird.f32 %v2104_v55 }
  0x87   :  { %1715 = vrsqrt.f32 %v2104_v55  ;;  %333 = vadd.xlane.f32.xlu2 %v277_v53  ;;  %331 = vadd.xlane.f32.xlu1 %v276_v54 }
  0x88   :  { %329 = vadd.xlane.f32.xlu0 %v275_v56 }
  0x8a   :  { %v194_v60 = vpop.xlane.xlu2 %193  ;;  %v190_v61 = vpop.xlane.xlu1 %189 }
  0x8b   :  { %v2109_v62 = vpop.eup %1711  ;;  %v2111_v63 = vadd.f32 1e-10, %v194_v60  ;;  %v2113_v3 = vadd.f32 1e-10, %v190_v61  ;;  %v186_v4 = vpop.xlane.xlu0 %185 }
  0x8c   :  { %v2115_v10 = vpop.eup %1713  ;;  %v452_v11 = vmul.f32 %v2109_v62, %v2100_v50  ;;  %v2119_v15 = vadd.f32 1e-10, %v186_v4  ;;  %v132_v4 = vld [vmem:[#allocation5 + $0xc8] sm:$0xff]  ;;  %vm458_vm3 = vweird.f32 %v2109_v62 }
  0x8d   :  { %v2121_v17 = vpop.eup %1715  ;;  %v432_v21 = vmul.f32 %v2115_v10, %v2102_v51  ;;  %1717 = vrsqrt.f32 %v2111_v63  ;;  %vm438_vm4 = vweird.f32 %v2115_v10  ;;  %vm467_vm6 = vweird.f32 %v2111_v63  ;;  %vm2178_vm7 = vmor %vm457_vm0, %vm458_vm3 }
  0x8e   :  { %v412_v22 = vmul.f32 %v2121_v17, %v2104_v55  ;;  %1719 = vrsqrt.f32 %v2113_v3  ;;  %v453_v23 = vmul.f32 %v2109_v62, %v452_v11  ;;  %vm418_vm5 = vweird.f32 %v2121_v17  ;;  %vm2196_vm9 = vmor %vm437_vm1, %vm438_vm4 }
  0x8f   :  { %1721 = vrsqrt.f32 %v2119_v15  ;;  %339 = vadd.xlane.f32.xlu2 %v280_v5  ;;  %337 = vadd.xlane.f32.xlu1 %v279_v9  ;;  %v433_v29 = vmul.f32 %v2115_v10, %v432_v21  ;;  %v285_v21 = vmul.f32 %v133_v57, %v133_v57  ;;  %vm447_vm8 = vweird.f32 %v2113_v3  ;;  %vm2210_vm11 = vmor %vm417_vm2, %vm418_vm5 }
  0x90   :  { %335 = vadd.xlane.f32.xlu0 %v278_v16  ;;  %v413_v34 = vmul.f32 %v2121_v17, %v412_v22  ;;  %v454_v39 = vmul.f32 0.5, %v453_v23  ;;  %vm427_vm13 = vweird.f32 %v2119_v15 }
  0x91   :  { %v434_v47 = vmul.f32 0.5, %v433_v29 }
  0x92   :  { %v200_v35 = vpop.xlane.xlu2 %199  ;;  %v198_v37 = vpop.xlane.xlu1 %197  ;;  %v414_v53 = vmul.f32 0.5, %v413_v34  ;;  %v455_v54 = vsub.f32 1.5, %v454_v39  ;;  %v136_v34 = vld [vmem:[#allocation5 + $0xe8] sm:$0xff]  ;;  %v284_v39 = vmul.f32 %v132_v4, %v132_v4 }
  0x93   :  { %v2133_v38 = vpop.eup %1717  ;;  %v2135_v40 = vadd.f32 1e-10, %v200_v35  ;;  %v196_v41 = vpop.xlane.xlu0 %195  ;;  %v2144_v49 = vadd.f32 1e-10, %v198_v37  ;;  %v435_v60 = vsub.f32 1.5, %v434_v47 }
  0x94   :  { %v2137_v44 = vpop.eup %1719  ;;  %v462_v48 = vmul.f32 %v2133_v38, %v2111_v63  ;;  %v415_v5 = vsub.f32 1.5, %v414_v53  ;;  %v2156_v9 = vadd.f32 1e-10, %v196_v41  ;;  %v456_v23 = vmul.f32 %v2109_v62, %v455_v54  ;;  %v98_v41 = vld [vmem:[#allocation2 + $0xe8] sm:$0xff] }
  0x95   :  { %v2139_v46 = vpop.eup %1721  ;;  %1723 = vrsqrt.f32 %v2135_v40  ;;  %v442_v56 = vmul.f32 %v2137_v44, %v2113_v3  ;;  %v288_v53 = vmul.f32 %v136_v34, %v136_v34  ;;  %v174_v50 = vmul.f32 %v98_v41, %v98_v41 }
  0x96   :  { %v422_v58 = vmul.f32 %v2139_v46, %v2119_v15  ;;  %v463_v61 = vmul.f32 %v2133_v38, %v462_v48  ;;  %1725 = vrsqrt.f32 %v2144_v49  ;;  %v416_v48 = vmul.f32 %v2121_v17, %v415_v5 }
  0x97   :  { %345 = vadd.xlane.f32.xlu2 %v283_v42  ;;  %343 = vadd.xlane.f32.xlu1 %v282_v43  ;;  %v443_v27 = vmul.f32 %v2137_v44, %v442_v56  ;;  %v436_v42 = vmul.f32 %v2115_v10, %v435_v60  ;;  %1727 = vrsqrt.f32 %v2156_v9  ;;  %v460_v56 = vsel %vm2178_vm7, %v2109_v62, %v456_v23 }
  0x98   :  { %341 = vadd.xlane.f32.xlu0 %v281_v45  ;;  %v423_v35 = vmul.f32 %v2139_v46, %v422_v58  ;;  %v464_v43 = vmul.f32 0.5, %v463_v61  ;;  %v135_v45 = vld [vmem:[#allocation5 + $0xe0] sm:$0xff]  ;;  %vm468_vm10 = vweird.f32 %v2133_v38  ;;  %vm448_vm12 = vweird.f32 %v2137_v44 }
  0x99   :  { %v444_v57 = vmul.f32 0.5, %v443_v27  ;;  %v287_v61 = vmul.f32 %v135_v45, %v135_v45  ;;  %vm428_vm14 = vweird.f32 %v2139_v46  ;;  %vm497_vm15 = vweird.f32 %v2135_v40  ;;  %vm2260_vm0 = vmor %vm467_vm6, %vm468_vm10 }
  0x9a   :  { %v206_v11 = vpop.xlane.xlu2 %205  ;;  %v204_v16 = vpop.xlane.xlu1 %203  ;;  %v424_v60 = vmul.f32 0.5, %v423_v35  ;;  %v465_v4 = vsub.f32 1.5, %v464_v43  ;;  %vm487_vm1 = vweird.f32 %v2144_v49  ;;  %vm2279_vm3 = vmor %vm447_vm8, %vm448_vm12  ;;  %vm477_vm4 = vweird.f32 %v2156_v9 }
  0x9b   :  { %v2158_v22 = vpop.eup %1723  ;;  %v2162_v28 = vadd.f32 1e-10, %v206_v11  ;;  %v2164_v29 = vadd.f32 1e-10, %v204_v16  ;;  %v202_v33 = vpop.xlane.xlu0 %201  ;;  %v2218_v11 = vmul.f32 %v460_v56, %v2024_v0  ;;  %v445_v34 = vsub.f32 1.5, %v444_v57  ;;  %vm2296_vm5 = vmor %vm427_vm13, %vm428_vm14 }
  0x9c   :  { %v492_v37 = vmul.f32 %v2158_v22, %v2135_v40  ;;  %v2185_v54 = vpop.eup %1725  ;;  %v2215_v5 = vadd.f32 1e-10, %v202_v33  ;;  %v466_v45 = vmul.f32 %v2133_v38, %v465_v4  ;;  %v137_v4 = vld [vmem:[#allocation5 + $0xf0] sm:$0xff]  ;;  %vm498_vm2 = vweird.f32 %v2158_v22 }
  0x9d   :  { %1729 = vrsqrt.f32 %v2162_v28  ;;  %v482_v62 = vmul.f32 %v2185_v54, %v2144_v49  ;;  %v2225_v27 = vpop.eup %1727  ;;  %v446_v58 = vmul.f32 %v2137_v44, %v445_v34  ;;  %vm527_vm6 = vweird.f32 %v2162_v28  ;;  %vm2315_vm7 = vmor %vm497_vm15, %vm498_vm2 }
  0x9e   :  { %v493_v52 = vmul.f32 %v2158_v22, %v492_v37  ;;  %1731 = vrsqrt.f32 %v2164_v29  ;;  %v472_v41 = vmul.f32 %v2225_v27, %v2156_v9  ;;  %vm488_vm8 = vweird.f32 %v2185_v54 }
  0x9f   :  { %351 = vadd.xlane.f32.xlu2 %v286_v59  ;;  %349 = vadd.xlane.f32.xlu1 %v285_v21  ;;  %v440_v59 = vsel %vm2196_vm9, %v2115_v10, %v436_v42  ;;  %v420_v10 = vsel %vm2210_vm11, %v2121_v17, %v416_v48  ;;  %v483_v55 = vmul.f32 %v2185_v54, %v482_v62  ;;  %1733 = vrsqrt.f32 %v2215_v5  ;;  %vm2348_vm11 = vmor %vm487_vm1, %vm488_vm8 }
  0xa0   :  { %347 = vadd.xlane.f32.xlu0 %v284_v39  ;;  %v494_v16 = vmul.f32 0.5, %v493_v52  ;;  %v2235_v17 = vmul.f32 %v440_v59, %v2026_v1  ;;  %v425_v39 = vsub.f32 1.5, %v424_v60  ;;  %v2243_v43 = vmul.f32 %v420_v10, %v2028_v2  ;;  %v100_v1 = vld [vmem:[#allocation2 + $0xf8] sm:$0xff] }
  0xa1   :  { %v484_v52 = vmul.f32 0.5, %v483_v55  ;;  %v473_v56 = vmul.f32 %v2225_v27, %v472_v41  ;;  %v176_v51 = vmul.f32 %v100_v1, %v100_v1  ;;  %v450_v3 = vsel %vm2279_vm3, %v2137_v44, %v446_v58 }
  0xa2   :  { %v212_v21 = vpop.xlane.xlu2 %211  ;;  %v210_v23 = vpop.xlane.xlu1 %209  ;;  %v495_v48 = vsub.f32 1.5, %v494_v16  ;;  %v426_v62 = vmul.f32 %v2139_v46, %v425_v39  ;;  %v99_v16 = vld [vmem:[#allocation2 + $0xf0] sm:$0xff]  ;;  %vm517_vm9 = vweird.f32 %v2164_v29  ;;  %vm478_vm10 = vweird.f32 %v2225_v27 }
  0xa3   :  { %v2228_v33 = vadd.f32 1e-10, %v212_v21  ;;  %v2230_v0 = vadd.f32 1e-10, %v210_v23  ;;  %v208_v35 = vpop.xlane.xlu0 %207  ;;  %v2232_v37 = vpop.eup %1729  ;;  %v474_v59 = vmul.f32 0.5, %v473_v56  ;;  %v485_v21 = vsub.f32 1.5, %v484_v52  ;;  %vm2364_vm14 = vmor %vm477_vm4, %vm478_vm10 }
  0xa4   :  { %v2240_v42 = vpop.eup %1731  ;;  %v522_v47 = vmul.f32 %v2232_v37, %v2162_v28  ;;  %v496_v55 = vmul.f32 %v2158_v22, %v495_v48  ;;  %v430_v1 = vsel %vm2296_vm5, %v2139_v46, %v426_v62  ;;  %v175_v52 = vmul.f32 %v99_v16, %v99_v16 }
  0xa5   :  { %1735 = vrsqrt.f32 %v2228_v33  ;;  %v512_v57 = vmul.f32 %v2240_v42, %v2164_v29  ;;  %v2266_v10 = vpop.eup %1733  ;;  %v475_v48 = vsub.f32 1.5, %v474_v59  ;;  %v2329_v59 = vmul.f32 %v450_v3, %v2038_v7  ;;  %v138_v7 = vld [vmem:[#allocation5 + $0xf8] sm:$0xff] }
  0xa6   :  { %v523_v2 = vmul.f32 %v2232_v37, %v522_v47  ;;  %1737 = vrsqrt.f32 %v2230_v0  ;;  %v502_v23 = vmul.f32 %v2266_v10, %v2215_v5  ;;  %v289_v47 = vmul.f32 %v137_v4, %v137_v4 }
  0xa7   :  { %355 = vadd.xlane.f32.xlu2 %v288_v53  ;;  %241 = vadd.xlane.f32.xlu1 %v174_v50  ;;  %v470_v53 = vsel %vm2260_vm0, %v2133_v38, %v466_v45  ;;  %v513_v63 = vmul.f32 %v2240_v42, %v512_v57  ;;  %v2273_v50 = vadd.f32 1e-10, %v208_v35  ;;  %v500_v60 = vsel %vm2315_vm7, %v2158_v22, %v496_v55 }
  0xa8   :  { %353 = vadd.xlane.f32.xlu0 %v287_v61  ;;  %v524_v38 = vmul.f32 0.5, %v523_v2  ;;  %v503_v44 = vmul.f32 %v2266_v10, %v502_v23  ;;  %v2309_v15 = vmul.f32 %v470_v53, %v2036_v6  ;;  %v139_v2 = vld [vmem:[#allocation5 + $0x100] sm:$0xff]  ;;  %v486_v6 = vmul.f32 %v2185_v54, %v485_v21 }
  0xa9   :  { %1739 = vrsqrt.f32 %v2273_v50  ;;  %v514_v46 = vmul.f32 0.5, %v513_v63  ;;  %v2332_v4 = vmul.f32 %v430_v1, %v2040_v8  ;;  %v101_v63 = vld [vmem:[#allocation2 + $0x100] sm:$0xff]  ;;  %v476_v22 = vmul.f32 %v2225_v27, %v475_v48 }
  0xaa   :  { %v218_v34 = vpop.xlane.xlu2 %217  ;;  %v216_v35 = vpop.xlane.xlu1 %215  ;;  %v525_v62 = vsub.f32 1.5, %v524_v38  ;;  %v504_v53 = vmul.f32 0.5, %v503_v44  ;;  %v291_v61 = vmul.f32 %v139_v2, %v139_v2  ;;  %v2342_v8 = vmul.f32 %v500_v60, %v2048_v12 }
  0xab   :  { %v2287_v39 = vpop.eup %1735  ;;  %v214_v45 = vpop.xlane.xlu0 %213  ;;  %v2320_v58 = vadd.f32 1e-10, %v218_v34  ;;  %vm528_vm12 = vweird.f32 %v2232_v37  ;;  %v515_v21 = vsub.f32 1.5, %v514_v46  ;;  %vm507_vm13 = vweird.f32 %v2215_v5 }
  0xac   :  { %v2306_v56 = vpop.eup %1737  ;;  %v552_v40 = vmul.f32 %v2287_v39, %v2228_v33  ;;  %v490_v12 = vsel %vm2348_vm11, %v2185_v54, %v486_v6  ;;  %v526_v38 = vmul.f32 %v2232_v37, %v525_v62  ;;  %v177_v3 = vmul.f32 %v101_v63, %v101_v63  ;;  %vm2387_vm15 = vmor %vm527_vm6, %vm528_vm12 }
  0xad   :  { %v542_v16 = vmul.f32 %v2306_v56, %v2230_v0  ;;  %1741 = vrsqrt.f32 %v2320_v58  ;;  %v2368_v1 = vadd.f32 1e-10, %v216_v35  ;;  %v2370_v48 = vadd.f32 1e-10, %v214_v45 }
  0xae   :  { %v553_v23 = vmul.f32 %v2287_v39, %v552_v40  ;;  %v290_v44 = vmul.f32 %v138_v7, %v138_v7  ;;  %v2381_v2 = vmul.f32 %v490_v12, %v2050_v13  ;;  %vm518_vm0 = vweird.f32 %v2240_v42  ;;  %v102_v7 = vld [vmem:[#allocation2 + $0x108] sm:$0xff] }
  0xaf   :  { %245 = vadd.xlane.f32.xlu2 %v176_v51  ;;  %357 = vadd.xlane.f32.xlu1 %v289_v47  ;;  %v2339_v55 = vpop.eup %1739  ;;  %v505_v47 = vsub.f32 1.5, %v504_v53  ;;  %v543_v57 = vmul.f32 %v2306_v56, %v542_v16  ;;  %1743 = vrsqrt.f32 %v2368_v1  ;;  %v530_v45 = vsel %vm2387_vm15, %v2232_v37, %v526_v38  ;;  %v103_v37 = vld [vmem:[#allocation2 + $0x110] sm:$0xff]  ;;  %vm2412_vm4 = vmor %vm517_vm9, %vm518_vm0 }
  0xb0   :  { %243 = vadd.xlane.f32.xlu0 %v175_v52  ;;  %v480_v52 = vsel %vm2364_vm14, %v2225_v27, %v476_v22  ;;  %v532_v9 = vmul.f32 %v2339_v55, %v2273_v50  ;;  %v516_v27 = vmul.f32 %v2240_v42, %v515_v21  ;;  %vm508_vm1 = vweird.f32 %v2266_v10  ;;  %v140_v22 = vld [vmem:[#allocation5 + $0x108] sm:$0xff] }
  0xb1   :  { %v554_v13 = vmul.f32 0.5, %v553_v23  ;;  %vm557_vm2 = vweird.f32 %v2228_v33  ;;  %1745 = vrsqrt.f32 %v2370_v48  ;;  %v2403_v60 = vmul.f32 %v480_v52, %v2052_v14  ;;  %vm2435_vm7 = vmor %vm507_vm13, %vm508_vm1 }
  0xb2   :  { %v224_v49 = vpop.xlane.xlu2 %223  ;;  %v222_v34 = vpop.xlane.xlu1 %221  ;;  %v506_v6 = vmul.f32 %v2266_v10, %v505_v47  ;;  %vm558_vm3 = vweird.f32 %v2287_v39  ;;  %v544_v40 = vmul.f32 0.5, %v543_v57  ;;  %vm547_vm5 = vweird.f32 %v2230_v0 }
  0xb3   :  { %v220_v54 = vpop.xlane.xlu0 %219  ;;  %v2378_v46 = vadd.f32 1e-10, %v224_v49  ;;  %v2400_v28 = vpop.eup %1741  ;;  %v533_v14 = vmul.f32 %v2339_v55, %v532_v9  ;;  %v2420_v63 = vadd.f32 1e-10, %v222_v34  ;;  %v2423_v16 = vmul.f32 %v530_v45, %v2060_v18  ;;  %vm2485_vm12 = vmor %vm557_vm2, %vm558_vm3 }
  0xb4   :  { %v582_v53 = vmul.f32 %v2400_v28, %v2320_v58  ;;  %v520_v29 = vsel %vm2412_vm4, %v2240_v42, %v516_v27  ;;  %vm548_vm6 = vweird.f32 %v2306_v56  ;;  %v555_v21 = vsub.f32 1.5, %v554_v13 }
  0xb5   :  { %1747 = vrsqrt.f32 %v2378_v46  ;;  %v179_v38 = vmul.f32 %v103_v37, %v103_v37  ;;  %v2441_v23 = vpop.eup %1743  ;;  %v510_v49 = vsel %vm2435_vm7, %v2266_v10, %v506_v6  ;;  %v545_v47 = vsub.f32 1.5, %v544_v40  ;;  %vm2503_vm13 = vmor %vm547_vm5, %vm548_vm6 }
  0xb6   :  { %v583_v18 = vmul.f32 %v2400_v28, %v582_v53  ;;  %1749 = vrsqrt.f32 %v2420_v63  ;;  %v178_v52 = vmul.f32 %v102_v7, %v102_v7  ;;  %v2456_v9 = vmul.f32 %v520_v29, %v2062_v19 }
  0xb7   :  { %361 = vadd.xlane.f32.xlu2 %v291_v61  ;;  %247 = vadd.xlane.f32.xlu1 %v177_v3  ;;  %v2429_v61 = vadd.f32 1e-10, %v220_v54  ;;  %v292_v3 = vmul.f32 %v140_v22, %v140_v22  ;;  %v2449_v41 = vpop.eup %1745  ;;  %v534_v54 = vmul.f32 0.5, %v533_v14  ;;  %v556_v27 = vmul.f32 %v2287_v39, %v555_v21 }
  0xb8   :  { %359 = vadd.xlane.f32.xlu0 %v290_v44  ;;  %v572_v44 = vmul.f32 %v2441_v23, %v2368_v1  ;;  %v584_v10 = vmul.f32 0.5, %v583_v18  ;;  %v562_v35 = vmul.f32 %v2449_v41, %v2370_v48  ;;  %vm537_vm8 = vweird.f32 %v2273_v50 }
  0xb9   :  { %1751 = vrsqrt.f32 %v2429_v61  ;;  %vm587_vm9 = vweird.f32 %v2320_v58  ;;  %v2468_v19 = vmul.f32 %v510_v49, %v2064_v20  ;;  %vm538_vm10 = vweird.f32 %v2339_v55  ;;  %v142_v20 = vld [vmem:[#allocation5 + $0x118] sm:$0xff] }
  0xba   :  { %v230_v12 = vpop.xlane.xlu2 %229  ;;  %v228_v42 = vpop.xlane.xlu1 %227  ;;  %v573_v45 = vmul.f32 %v2441_v23, %v572_v44  ;;  %v563_v6 = vmul.f32 %v2449_v41, %v562_v35  ;;  %v546_v40 = vmul.f32 %v2306_v56, %v545_v47  ;;  %v535_v14 = vsub.f32 1.5, %v534_v54  ;;  %vm2533_vm1 = vmor %vm537_vm8, %vm538_vm10 }
  0xbb   :  { %v2447_v5 = vadd.f32 1e-10, %v230_v12  ;;  %v226_v34 = vpop.xlane.xlu0 %225  ;;  %v2453_v57 = vpop.eup %1747  ;;  %v2472_v37 = vadd.f32 1e-10, %v228_v42  ;;  %vm577_vm11 = vweird.f32 %v2368_v1  ;;  %v585_v7 = vsub.f32 1.5, %v584_v10  ;;  %v105_v1 = vld [vmem:[#allocation2 + $0x120] sm:$0xff] }
  0xbc   :  { %v612_v13 = vmul.f32 %v2453_v57, %v2378_v46  ;;  %v2474_v62 = vpop.eup %1749  ;;  %v574_v51 = vmul.f32 0.5, %v573_v45  ;;  %v560_v18 = vsel %vm2485_vm12, %v2287_v39, %v556_v27  ;;  %v564_v12 = vmul.f32 0.5, %v563_v6 }
  0xbd   :  { %1753 = vrsqrt.f32 %v2447_v5  ;;  %v602_v21 = vmul.f32 %v2474_v62, %v2420_v63  ;;  %vm567_vm14 = vweird.f32 %v2370_v48  ;;  %v2509_v54 = vadd.f32 1e-10, %v226_v34 }
  0xbe   :  { %v613_v53 = vmul.f32 %v2453_v57, %v612_v13  ;;  %1755 = vrsqrt.f32 %v2472_v37  ;;  %v550_v10 = vsel %vm2503_vm13, %v2306_v56, %v546_v40  ;;  %v536_v35 = vmul.f32 %v2339_v55, %v535_v14 }
  0xbf   :  { %251 = vadd.xlane.f32.xlu2 %v179_v38  ;;  %363 = vadd.xlane.f32.xlu1 %v292_v3  ;;  %v2479_v22 = vpop.eup %1751  ;;  %v603_v39 = vmul.f32 %v2474_v62, %v602_v21  ;;  %v2519_v45 = vmul.f32 %v560_v18, %v2072_v24  ;;  %v586_v13 = vmul.f32 %v2400_v28, %v585_v7  ;;  %vm588_vm15 = vweird.f32 %v2400_v28 }
  0xc0   :  { %249 = vadd.xlane.f32.xlu0 %v178_v52  ;;  %v614_v42 = vmul.f32 0.5, %v613_v53  ;;  %v592_v33 = vmul.f32 %v2479_v22, %v2429_v61  ;;  %v294_v52 = vmul.f32 %v142_v20, %v142_v20  ;;  %v575_v34 = vsub.f32 1.5, %v574_v51  ;;  %vm2544_vm2 = vmor %vm587_vm9, %vm588_vm15 }
  0xc1   :  { %v565_v6 = vsub.f32 1.5, %v564_v12  ;;  %vm617_vm0 = vweird.f32 %v2378_v46  ;;  %v604_v56 = vmul.f32 0.5, %v603_v39  ;;  %v2527_v14 = vmul.f32 %v550_v10, %v2074_v25 }
  0xc2   :  { %v236_v38 = vpop.xlane.xlu2 %235  ;;  %v234_v49 = vpop.xlane.xlu1 %233  ;;  %v593_v0 = vmul.f32 %v2479_v22, %v592_v33  ;;  %v615_v53 = vsub.f32 1.5, %v614_v42  ;;  %1757 = vrsqrt.f32 %v2509_v54  ;;  %v540_v7 = vsel %vm2533_vm1, %v2339_v55, %v536_v35 }
  0xc3   :  { %v2497_v3 = vpop.eup %1753  ;;  %v232_v44 = vpop.xlane.xlu0 %231  ;;  %vm578_vm3 = vweird.f32 %v2441_v23  ;;  %vm568_vm4 = vweird.f32 %v2449_v41  ;;  %vm607_vm5 = vweird.f32 %v2420_v63  ;;  %v590_v50 = vsel %vm2544_vm2, %v2400_v28, %v586_v13  ;;  %v143_v28 = vld [vmem:[#allocation5 + $0x120] sm:$0xff] }
  0xc4   :  { %v642_v27 = vmul.f32 %v2497_v3, %v2447_v5  ;;  %v2524_v40 = vpop.eup %1755  ;;  %v594_v20 = vmul.f32 0.5, %v593_v0  ;;  %v576_v51 = vmul.f32 %v2441_v23, %v575_v34  ;;  %vm618_vm6 = vweird.f32 %v2453_v57  ;;  %vm2564_vm7 = vmor %vm577_vm11, %vm578_vm3 }
  0xc5   :  { %v632_v58 = vmul.f32 %v2524_v40, %v2472_v37  ;;  %v566_v55 = vmul.f32 %v2449_v41, %v565_v6  ;;  %v616_v21 = vmul.f32 %v2453_v57, %v615_v53  ;;  %v605_v18 = vsub.f32 1.5, %v604_v56  ;;  %vm2579_vm8 = vmor %vm567_vm14, %vm568_vm4  ;;  %v106_v6 = vld [vmem:[#allocation2 + $0x128] sm:$0xff] }
  0xc6   :  { %v643_v29 = vmul.f32 %v2497_v3, %v642_v27  ;;  %v2560_v12 = vadd.f32 1e-10, %v236_v38  ;;  %v595_v47 = vsub.f32 1.5, %v594_v20  ;;  %v2570_v10 = vadd.f32 1e-10, %v232_v44  ;;  %vm2595_vm11 = vmor %vm617_vm0, %vm618_vm6  ;;  %v104_v44 = vld [vmem:[#allocation2 + $0x118] sm:$0xff] }
  0xc7   :  { %367 = vadd.xlane.f32.xlu2 %v294_v52  ;;  %v2568_v52 = vadd.f32 1e-10, %v234_v49  ;;  %v2573_v0 = vmul.f32 %v540_v7, %v2076_v26  ;;  %vm608_vm9 = vweird.f32 %v2474_v62  ;;  %vm597_vm10 = vweird.f32 %v2429_v61  ;;  %v141_v27 = vld [vmem:[#allocation5 + $0x110] sm:$0xff] }
  0xc8   :  { %v644_v39 = vmul.f32 0.5, %v643_v29  ;;  %1759 = vrsqrt.f32 %v2560_v12  ;;  %v2586_v38 = vpop.eup %1757  ;;  %v2589_v49 = vmul.f32 %v590_v50, %v2084_v30  ;;  %vm598_vm12 = vweird.f32 %v2479_v22  ;;  %vm2632_vm15 = vmor %vm607_vm5, %vm608_vm9 }
  0xc9   :  { %vm647_vm13 = vweird.f32 %v2447_v5  ;;  %v633_v48 = vmul.f32 %v2524_v40, %v632_v58  ;;  %1761 = vrsqrt.f32 %v2568_v52  ;;  %v580_v30 = vsel %vm2564_vm7, %v2441_v23, %v576_v51  ;;  %vm2650_vm1 = vmor %vm597_vm10, %vm598_vm12 }
  0xca   :  { %v298_v42 = vpop.xlane.xlu2 %297  ;;  %v240_v33 = vpop.xlane.xlu1 %239  ;;  %v570_v46 = vsel %vm2579_vm8, %v2449_v41, %v566_v55  ;;  %v620_v13 = vsel %vm2595_vm11, %v2453_v57, %v616_v21  ;;  %v622_v34 = vmul.f32 %v2586_v38, %v2509_v54  ;;  %v606_v53 = vmul.f32 %v2474_v62, %v605_v18 }
  0xcb   :  { %v238_v35 = vpop.xlane.xlu0 %237  ;;  %v596_v56 = vmul.f32 %v2479_v22, %v595_v47  ;;  %v645_v24 = vsub.f32 1.5, %v644_v39  ;;  %1763 = vrsqrt.f32 %v2570_v10  ;;  %v180_v20 = vmul.f32 %v104_v44, %v104_v44 }
  0xcc   :  { %v623_v23 = vmul.f32 %v2586_v38, %v622_v34  ;;  %v293_v29 = vmul.f32 %v141_v27, %v141_v27  ;;  %v2618_v41 = vadd.f32 1e-10, %v298_v42  ;;  %vm648_vm14 = vweird.f32 %v2497_v3 }
  0xcd   :  { %v634_v57 = vmul.f32 0.5, %v633_v48  ;;  %v2621_v7 = vadd.f32 1e-10, %v240_v33  ;;  %v182_v25 = vmul.f32 %v106_v6, %v106_v6  ;;  %v2626_v51 = vmul.f32 %v580_v30, %v2086_v31  ;;  %253 = vadd.xlane.f32.xlu1 %v180_v20  ;;  %vm2688_vm4 = vmor %vm647_vm13, %vm648_vm14 }
  0xce   :  { %v2623_v50 = vpop.eup %1759  ;;  %vm637_vm0 = vweird.f32 %v2472_v37  ;;  %v624_v55 = vmul.f32 0.5, %v623_v23  ;;  %365 = vadd.xlane.f32.xlu0 %v293_v29  ;;  %1765 = vrsqrt.f32 %v2618_v41  ;;  %v2641_v31 = vmul.f32 %v570_v46, %v2088_v32 }
  0xcf   :  { %v2638_v18 = vpop.eup %1761  ;;  %v2644_v42 = vmul.f32 %v620_v13, %v2096_v36  ;;  %vm638_vm2 = vweird.f32 %v2524_v40  ;;  %v672_v33 = vmul.f32 %v2623_v50, %v2560_v12  ;;  %257 = vadd.xlane.f32.xlu2 %v182_v25  ;;  %v610_v36 = vsel %vm2632_vm15, %v2474_v62, %v606_v53 }
  0xd0   :  { %v600_v61 = vsel %vm2650_vm1, %v2479_v22, %v596_v56  ;;  %v646_v47 = vmul.f32 %v2497_v3, %v645_v24  ;;  %v662_v39 = vmul.f32 %v2638_v18, %v2568_v52  ;;  %v635_v44 = vsub.f32 1.5, %v634_v57  ;;  %v1863_v24 = vld [vmem:[#allocation2 + $0x98] sm:$0xff]  ;;  %vm2715_vm7 = vmor %vm637_vm0, %vm638_vm2 }
  0xd1   :  { %v2666_v48 = vpop.eup %1763  ;;  %v673_v27 = vmul.f32 %v2623_v50, %v672_v33  ;;  %1767 = vrsqrt.f32 %v2621_v7  ;;  %v2670_v30 = vadd.f32 1e-10, %v238_v35  ;;  %v625_v62 = vsub.f32 1.5, %v624_v55  ;;  %v1864_v35 = vld [vmem:[#allocation2 + $0x90] sm:$0xff] }
  0xd2   :  { %v304_v21 = vpop.xlane.xlu2 %303  ;;  %v302_v26 = vpop.xlane.xlu1 %301  ;;  %v663_v46 = vmul.f32 %v2638_v18, %v662_v39  ;;  %v652_v22 = vmul.f32 %v2666_v48, %v2570_v10  ;;  %v295_v13 = vmul.f32 %v143_v28, %v143_v28  ;;  %vm627_vm3 = vweird.f32 %v2509_v54  ;;  %v1865_v39 = vld [vmem:[#allocation2 + $0xb8] sm:$0xff] }
  0xd3   :  { %v300_v32 = vpop.xlane.xlu0 %299  ;;  %v674_v34 = vmul.f32 0.5, %v673_v27  ;;  %v181_v6 = vmul.f32 %v105_v1, %v105_v1  ;;  %v2676_v53 = vadd.f32 1e-10, %v304_v21  ;;  %v2680_v23 = vmul.f32 %v1863_v24, %v610_v36 }
  0xd4   :  { %v2678_v56 = vpop.eup %1765  ;;  %v2682_v20 = vmul.f32 %v1864_v35, %v600_v61  ;;  %v664_v57 = vmul.f32 0.5, %v663_v46  ;;  %v653_v25 = vmul.f32 %v2666_v48, %v652_v22  ;;  %v650_v58 = vsel %vm2688_vm4, %v2497_v3, %v646_v47  ;;  %v1866_v35 = vld [vmem:[#allocation2 + $0xb0] sm:$0xff] }
  0xd5   :  { %v636_v55 = vmul.f32 %v2524_v40, %v635_v44  ;;  %v830_v21 = vmul.f32 %v2678_v56, %v2618_v41  ;;  %v2699_v63 = vadd.f32 1e-10, %v302_v26  ;;  %v626_v5 = vmul.f32 %v2586_v38, %v625_v62  ;;  %369 = vadd.xlane.f32.xlu1 %v295_v13 }
  0xd6   :  { %vm628_vm5 = vweird.f32 %v2586_v38  ;;  %v675_v33 = vsub.f32 1.5, %v674_v34  ;;  %1769 = vrsqrt.f32 %v2670_v30  ;;  %255 = vadd.xlane.f32.xlu0 %v181_v6  ;;  %vm677_vm6 = vweird.f32 %v2560_v12 }
  0xd7   :  { %v2704_v36 = vpop.eup %1767  ;;  %v665_v3 = vsub.f32 1.5, %v664_v57  ;;  %v831_v61 = vmul.f32 %v2678_v56, %v830_v21  ;;  %1771 = vrsqrt.f32 %v2676_v53  ;;  %v2709_v1 = vmul.f32 %v1865_v39, %v650_v58  ;;  %vm2729_vm9 = vmor %vm627_vm3, %vm628_vm5  ;;  %v1867_v58 = vld [vmem:[#allocation2 + $0xa8] sm:$0xff] }
  0xd8   :  { %vm667_vm8 = vweird.f32 %v2568_v52  ;;  %v654_v44 = vmul.f32 0.5, %v653_v25  ;;  %v2720_v27 = vadd.f32 1e-10, %v300_v32  ;;  %v640_v62 = vsel %vm2715_vm7, %v2524_v40, %v636_v55  ;;  %v144_v40 = vld [vmem:[#allocation5 + $0x128] sm:$0xff] }
  0xd9   :  { %vm678_vm10 = vweird.f32 %v2623_v50  ;;  %v832_v37 = vmul.f32 0.5, %v831_v61  ;;  %1773 = vrsqrt.f32 %v2699_v63  ;;  %v630_v32 = vsel %vm2729_vm9, %v2586_v38, %v626_v5 }
  0xda   :  { %v310_v28 = vpop.xlane.xlu2 %309  ;;  %v676_v22 = vmul.f32 %v2623_v50, %v675_v33  ;;  %vm668_vm11 = vweird.f32 %v2638_v18  ;;  %v692_v54 = vmul.f32 %v2704_v36, %v2621_v7  ;;  %v308_v13 = vpop.xlane.xlu1 %307  ;;  %v666_v34 = vmul.f32 %v2638_v18, %v665_v3  ;;  %vm2753_vm14 = vmor %vm677_vm6, %vm678_vm10 }
  0xdb   :  { %v306_v47 = vpop.xlane.xlu0 %305  ;;  %v833_v6 = vsub.f32 1.5, %v832_v37  ;;  %vm835_vm12 = vweird.f32 %v2618_v41  ;;  %vm836_vm13 = vweird.f32 %v2678_v56  ;;  %v2747_v38 = vmul.f32 %v1866_v35, %v640_v62  ;;  %vm2767_vm0 = vmor %vm667_vm8, %vm668_vm11 }
  0xdc   :  { %v2745_v24 = vpop.eup %1769  ;;  %v655_v57 = vsub.f32 1.5, %v654_v44  ;;  %vm657_vm15 = vweird.f32 %v2570_v10  ;;  %1775 = vrsqrt.f32 %v2720_v27  ;;  %v2761_v55 = vmul.f32 %v1867_v58, %v630_v32  ;;  %vm2780_vm2 = vmor %vm835_vm12, %vm836_vm13 }
  0xdd   :  { %v2759_v25 = vpop.eup %1771  ;;  %vm658_vm1 = vweird.f32 %v2666_v48  ;;  %v834_v21 = vmul.f32 %v2678_v56, %v833_v6  ;;  %v296_v5 = vmul.f32 %v144_v40, %v144_v40  ;;  %v680_v33 = vsel %vm2753_vm14, %v2623_v50, %v676_v22  ;;  %v1868_v22 = vld [vmem:[#allocation2 + $0xd0] sm:$0xff]  ;;  %v1870_v6 = vld [vmem:[#allocation2 + $0xc8] sm:$0xff] }
  0xde   :  { %v693_v52 = vmul.f32 %v2704_v36, %v692_v54  ;;  %v860_v61 = vmul.f32 %v2759_v25, %v2676_v53  ;;  %v2787_v39 = vadd.f32 1e-10, %v310_v28  ;;  %v670_v50 = vsel %vm2767_vm0, %v2638_v18, %v666_v34  ;;  %v1869_v54 = vld [vmem:[#allocation5] sm:$0xff]  ;;  %vm2824_vm4 = vmor %vm657_vm15, %vm658_vm1 }
  0xdf   :  { %v2789_v26 = vpop.eup %1773  ;;  %v838_v41 = vsel %vm2780_vm2, %v2678_v56, %v834_v21  ;;  %v682_v44 = vmul.f32 %v2745_v24, %v2670_v30  ;;  %371 = vadd.xlane.f32.xlu0 %v296_v5  ;;  %v2799_v62 = vadd.f32 1e-10, %v308_v13  ;;  %v2802_v28 = vmul.f32 %v2666_v48, %v655_v57 }
  0xe0   :  { %v861_v32 = vmul.f32 %v2759_v25, %v860_v61  ;;  %vm865_vm3 = vweird.f32 %v2676_v53  ;;  %v850_v18 = vmul.f32 %v2789_v26, %v2699_v63  ;;  %v2808_v56 = vmul.f32 %v1868_v22, %v680_v33 }
  0xe1   :  { %v1247_v40 = vmul.f32 %v1869_v54, %v838_v41  ;;  %1777 = vrsqrt.f32 %v2787_v39  ;;  %v2811_v13 = vadd.f32 1e-10, %v306_v47  ;;  %v2815_v35 = vmul.f32 %v1870_v6, %v670_v50 }
  0xe2   :  { %v316_v46 = vpop.xlane.xlu2 %315  ;;  %v2813_v34 = vpop.eup %1775  ;;  %v2817_v29 = vmul.f32 0.5, %v693_v52  ;;  %v862_v57 = vmul.f32 0.5, %v861_v32  ;;  %v851_v58 = vmul.f32 %v2789_v26, %v850_v18  ;;  %v683_v47 = vmul.f32 %v2745_v24, %v682_v44 }
  0xe3   :  { %v312_v37 = vpop.xlane.xlu0 %311  ;;  %vm855_vm5 = vweird.f32 %v2699_v63  ;;  %v840_v21 = vmul.f32 %v2813_v34, %v2720_v27  ;;  %1779 = vrsqrt.f32 %v2799_v62  ;;  %vm866_vm6 = vweird.f32 %v2759_v25  ;;  %v314_v3 = vpop.xlane.xlu1 %313 }
  0xe4   :  { %v863_v33 = vsub.f32 1.5, %v862_v57  ;;  %v852_v10 = vmul.f32 0.5, %v851_v58  ;;  %v1285_v52 = vsub.f32 %v2243_v43, %v1247_v40  ;;  %vm845_vm7 = vweird.f32 %v2720_v27  ;;  %vm867_vm9 = vmor %vm865_vm3, %vm866_vm6  ;;  %v1871_v58 = vld [vmem:[#allocation5 + $0x18] sm:$0xff] }
  0xe5   :  { %v841_v61 = vmul.f32 %v2813_v34, %v840_v21  ;;  %1781 = vrsqrt.f32 %v2811_v13  ;;  %vm856_vm8 = vweird.f32 %v2789_v26  ;;  %v2844_v44 = vadd.f32 1e-10, %v316_v46 }
  0xe6   :  { %v864_v50 = vmul.f32 %v2759_v25, %v863_v33  ;;  %v853_v41 = vsub.f32 1.5, %v852_v10  ;;  %v2848_v18 = vmul.f32 0.5, %v683_v47  ;;  %vm895_vm10 = vweird.f32 %v2787_v39  ;;  %vm857_vm12 = vmor %vm855_vm5, %vm856_vm8 }
  0xe7   :  { %v2846_v32 = vpop.eup %1777  ;;  %v842_v43 = vmul.f32 0.5, %v841_v61  ;;  %v2853_v22 = vadd.f32 1e-10, %v314_v3  ;;  %vm846_vm11 = vweird.f32 %v2813_v34  ;;  %v1323_v57 = vmul.f32 %v1285_v52, %v1285_v52  ;;  %v1872_v61 = vld [vmem:[#allocation5 + $0x10] sm:$0xff] }
  0xe8   :  { %v868_v54 = vsel %vm867_vm9, %v2759_v25, %v864_v50  ;;  %v854_v40 = vmul.f32 %v2789_v26, %v853_v41  ;;  %v890_v46 = vmul.f32 %v2846_v32, %v2787_v39  ;;  %1783 = vrsqrt.f32 %v2844_v44  ;;  %vm847_vm14 = vmor %vm845_vm7, %vm846_vm11 }
  0xe9   :  { %v2860_v6 = vpop.eup %1779  ;;  %v1250_v53 = vmul.f32 %v1871_v58, %v868_v54  ;;  %v843_v47 = vsub.f32 1.5, %v842_v43  ;;  %vm885_vm13 = vweird.f32 %v2799_v62  ;;  %1785 = vrsqrt.f32 %v2853_v22  ;;  %v1873_v58 = vld [vmem:[#allocation5 + $0x8] sm:$0xff] }
  0xea   :  { %v322_v25 = vpop.xlane.xlu2 %321  ;;  %v858_v33 = vsel %vm857_vm12, %v2789_v26, %v854_v40  ;;  %v891_v10 = vmul.f32 %v2846_v32, %v890_v46  ;;  %v880_v3 = vmul.f32 %v2860_v6, %v2799_v62  ;;  %v2878_v41 = vadd.f32 1e-10, %v312_v37 }
  0xeb   :  { %v2867_v21 = vpop.xlane.xlu0 %317  ;;  %v2874_v52 = vpop.eup %1781  ;;  %v1249_v63 = vmul.f32 %v1872_v61, %v858_v33  ;;  %v844_v50 = vmul.f32 %v2813_v34, %v843_v47  ;;  %vm875_vm15 = vweird.f32 %v2811_v13  ;;  %v1288_v40 = vsub.f32 %v2329_v59, %v1250_v53 }
  0xec   :  { %v892_v26 = vmul.f32 0.5, %v891_v10  ;;  %v881_v43 = vmul.f32 %v2860_v6, %v880_v3  ;;  %v870_v54 = vmul.f32 %v2874_v52, %v2811_v13  ;;  %vm896_vm0 = vweird.f32 %v2846_v32  ;;  %v320_v3 = vpop.xlane.xlu1 %319 }
  0xed   :  { %v848_v46 = vsel %vm847_vm14, %v2813_v34, %v844_v50  ;;  %v2891_v37 = vadd.f32 1e-10, %v322_v25  ;;  %v1287_v5 = vsub.f32 %v2235_v17, %v1249_v63  ;;  %vm886_vm1 = vweird.f32 %v2860_v6  ;;  %vm897_vm3 = vmor %vm895_vm10, %vm896_vm0 }
  0xee   :  { %v1248_v47 = vmul.f32 %v1873_v58, %v848_v46  ;;  %v893_v27 = vsub.f32 1.5, %v892_v26  ;;  %v882_v33 = vmul.f32 0.5, %v881_v43  ;;  %v871_v10 = vmul.f32 %v2874_v52, %v870_v54  ;;  %v2894_v61 = vpop.eup %1783  ;;  %v1874_v58 = vld [vmem:[#allocation5 + $0x30] sm:$0xff]  ;;  %vm887_vm6 = vmor %vm885_vm13, %vm886_vm1 }
  0xef   :  { %vm876_vm2 = vweird.f32 %v2874_v52  ;;  %1787 = vrsqrt.f32 %v2878_v41  ;;  %v2902_v50 = vpop.eup %1785  ;;  %v1326_v26 = vmul.f32 %v1288_v40, %v1288_v40  ;;  %v920_v17 = vmul.f32 %v2894_v61, %v2844_v44 }
  0xf0   :  { %v1286_v59 = vsub.f32 %v2332_v4, %v1248_v47  ;;  %v894_v34 = vmul.f32 %v2846_v32, %v893_v27  ;;  %v883_v53 = vsub.f32 1.5, %v882_v33  ;;  %v872_v25 = vmul.f32 0.5, %v871_v10  ;;  %vm877_vm7 = vmor %vm875_vm15, %vm876_vm2 }
  0xf1   :  { %vm925_vm5 = vweird.f32 %v2844_v44  ;;  %1789 = vrsqrt.f32 %v2891_v37  ;;  %v2912_v4 = vadd.f32 1e-10, %v320_v3  ;;  %v1325_v46 = vmul.f32 %v1287_v5, %v1287_v5 }
  0xf2   :  { %v1324_v63 = vmul.f32 %v1286_v59, %v1286_v59  ;;  %v898_v43 = vsel %vm897_vm3, %v2846_v32, %v894_v34  ;;  %v884_v54 = vmul.f32 %v2860_v6, %v883_v53  ;;  %v873_v40 = vsub.f32 1.5, %v872_v25  ;;  %v328_v33 = vpop.xlane.xlu2 %327  ;;  %v1875_v34 = vld [vmem:[#allocation5 + $0x28] sm:$0xff] }
  0xf3   :  { %v1253_v47 = vmul.f32 %v1874_v58, %v898_v43  ;;  %v921_v39 = vmul.f32 %v2894_v61, %v920_v17  ;;  %v910_v27 = vmul.f32 %v2902_v50, %v2853_v22  ;;  %v2923_v10 = vpop.xlane.xlu0 %323  ;;  %1791 = vrsqrt.f32 %v2912_v4 }
  0xf4   :  { %v1644_v32 = vadd.f32 %v1324_v63, %v1323_v57  ;;  %v888_v3 = vsel %vm887_vm6, %v2860_v6, %v884_v54  ;;  %v874_v5 = vmul.f32 %v2874_v52, %v873_v40  ;;  %vm915_vm8 = vweird.f32 %v2853_v22  ;;  %v1876_v54 = vld [vmem:[#allocation5 + $0x20] sm:$0xff] }
  0xf5   :  { %v2928_v59 = vpop.eup %1787  ;;  %v1252_v62 = vmul.f32 %v1875_v34, %v888_v3  ;;  %v922_v53 = vmul.f32 0.5, %v921_v39  ;;  %v911_v25 = vmul.f32 %v2902_v50, %v910_v27  ;;  %vm905_vm9 = vweird.f32 %v2878_v41 }
  0xf6   :  { %v1645_v57 = vadd.f32 %v1644_v32, %v1325_v46  ;;  %v878_v6 = vsel %vm877_vm7, %v2874_v52, %v874_v5  ;;  %v900_v17 = vmul.f32 %v2928_v59, %v2878_v41  ;;  %v1291_v43 = vsub.f32 %v2403_v60, %v1253_v47  ;;  %v326_v32 = vpop.xlane.xlu1 %325 }
  0xf7   :  { %v2940_v63 = vpop.eup %1789  ;;  %v1290_v13 = vsub.f32 %v2309_v15, %v1252_v62  ;;  %v1251_v40 = vmul.f32 %v1876_v54, %v878_v6  ;;  %v923_v58 = vsub.f32 1.5, %v922_v53  ;;  %v912_v27 = vmul.f32 0.5, %v911_v25 }
  0xf8   :  { %v1646_v39 = vadd.f32 %v1645_v57, %v1326_v26  ;;  %v901_v46 = vmul.f32 %v2928_v59, %v900_v17  ;;  %v950_v52 = vmul.f32 %v2940_v63, %v2891_v37  ;;  %vm955_vm10 = vweird.f32 %v2891_v37 }
  0xf9   :  { %v1289_v3 = vsub.f32 %v2218_v11, %v1251_v40  ;;  %v924_v5 = vmul.f32 %v2894_v61, %v923_v58  ;;  %vm926_vm11 = vweird.f32 %v2894_v61  ;;  %vm916_vm12 = vweird.f32 %v2902_v50  ;;  %v2952_v15 = vpop.eup %1791 }
  0xfa   :  { %v913_v60 = vsub.f32 1.5, %v912_v27  ;;  %v902_v26 = vmul.f32 0.5, %v901_v46  ;;  %vm906_vm13 = vweird.f32 %v2928_v59  ;;  %v951_v47 = vmul.f32 %v2940_v63, %v950_v52  ;;  %vm2960_vm14 = vmor %vm925_vm5, %vm926_vm11  ;;  %v334_v40 = vpop.xlane.xlu2 %333 }
  0xfb   :  { %v1329_v34 = vmul.f32 %v1291_v43, %v1291_v43  ;;  %v1328_v62 = vmul.f32 %v1290_v13, %v1290_v13  ;;  %v1327_v53 = vmul.f32 %v1289_v3, %v1289_v3  ;;  %v940_v11 = vmul.f32 %v2952_v15, %v2912_v4  ;;  %vm917_vm0 = vmor %vm915_vm8, %vm916_vm12  ;;  %v2977_v58 = vpop.xlane.xlu0 %329  ;;  %v1877_v3 = vld [vmem:[#allocation5 + $0x40] sm:$0xff] }
  0xfc   :  { %v914_v57 = vmul.f32 %v2902_v50, %v913_v60  ;;  %v903_v6 = vsub.f32 1.5, %v902_v26  ;;  %v952_v17 = vmul.f32 0.5, %v951_v47  ;;  %vm956_vm15 = vweird.f32 %v2940_v63  ;;  %vm907_vm1 = vmor %vm905_vm9, %vm906_vm13  ;;  %v1879_v26 = vld [vmem:[#allocation5 + $0x38] sm:$0xff] }
  0xfd   :  { %v1647_v54 = vadd.f32 %v1646_v39, %v1327_v53  ;;  %v928_v43 = vsel %vm2960_vm14, %v2894_v61, %v924_v5  ;;  %v941_v44 = vmul.f32 %v2952_v15, %v940_v11  ;;  %v2975_v13 = vadd.f32 1e-10, %v2867_v21  ;;  %v1878_v21 = vld [vmem:[#allocation5 + $0x48] sm:$0xff]  ;;  %v1880_v11 = vld [vmem:[#allocation2 + $0xc0] sm:$0xff] }
  0xfe   :  { %v918_v27 = vsel %vm917_vm0, %v2902_v50, %v914_v57  ;;  %v904_v39 = vmul.f32 %v2928_v59, %v903_v6  ;;  %v953_v46 = vsub.f32 1.5, %v952_v17  ;;  %v2981_v52 = vadd.f32 1e-10, %v328_v33 }
  0xff   :  { %v1648_v61 = vadd.f32 %v1647_v54, %v1328_v62  ;;  %v1255_v5 = vmul.f32 %v1877_v3, %v918_v27  ;;  %v942_v22 = vmul.f32 0.5, %v941_v44  ;;  %1793 = vrsqrt.f32 %v2975_v13  ;;  %v1882_v3 = vld [vmem:[#allocation5 + $0x60] sm:$0xff] }
 0x100   :  { %v1256_v60 = vmul.f32 %v1878_v21, %v928_v43  ;;  %v908_v50 = vsel %vm907_vm1, %v2928_v59, %v904_v39  ;;  %vm945_vm2 = vweird.f32 %v2912_v4  ;;  %vm946_vm3 = vweird.f32 %v2952_v15  ;;  %v1881_v43 = vld [vmem:[#allocation5 + $0x58] sm:$0xff] }
 0x101   :  { %v1649_v33 = vadd.f32 %v1648_v61, %v1329_v34  ;;  %v1254_v47 = vmul.f32 %v1879_v26, %v908_v50  ;;  %v954_v62 = vmul.f32 %v2940_v63, %v953_v46  ;;  %v943_v53 = vsub.f32 1.5, %v942_v22  ;;  %v332_v34 = vpop.xlane.xlu1 %331  ;;  %vm947_vm5 = vmor %vm945_vm2, %vm946_vm3 }
 0x102   :  { %v3852_v41 = vsel %vm2824_vm4, %v2666_v48, %v2802_v28  ;;  %v695_v59 = vsub.f32 1.5, %v2817_v29  ;;  %1795 = vrsqrt.f32 %v2981_v52  ;;  %v3001_v57 = vadd.f32 1e-10, %v326_v32  ;;  %vm3010_vm4 = vmor %vm955_vm10, %vm956_vm15 }
 0x103   :  { %v2997_v25 = vmul.f32 %v1880_v11, %v3852_v41  ;;  %v685_v6 = vsub.f32 1.5, %v2848_v18  ;;  %v1293_v17 = vsub.f32 %v2342_v8, %v1255_v5  ;;  %v1292_v54 = vsub.f32 %v2381_v2, %v1254_v47 }
 0x104   :  { %v944_v28 = vmul.f32 %v2952_v15, %v943_v53  ;;  %v1294_v29 = vsub.f32 %v2468_v19, %v1256_v60  ;;  %1797 = vrsqrt.f32 %v3001_v57  ;;  %v3022_v8 = vadd.f32 1e-10, %v2923_v10 }
 0x105   :  { %v3024_v2 = vadd.f32 1e-10, %v334_v40  ;;  %v3026_v12 = vpop.eup %1793  ;;  %v1330_v18 = vmul.f32 %v1292_v54, %v1292_v54  ;;  %v958_v37 = vsel %vm3010_vm4, %v2940_v63, %v954_v62  ;;  %v3032_v32 = vadd.f32 1e-10, %v332_v34  ;;  %v340_v63 = vpop.xlane.xlu2 %339 }
 0x106   :  { %v948_v19 = vsel %vm947_vm5, %v2952_v15, %v944_v28  ;;  %v3035_v4 = vmul.f32 %v2704_v36, %v695_v59  ;;  %v930_v10 = vmul.f32 %v3026_v12, %v2975_v13  ;;  %1799 = vrsqrt.f32 %v3022_v8  ;;  %v3044_v15 = vpop.xlane.xlu0 %335 }
 0x107   :  { %v1258_v44 = vmul.f32 %v1881_v43, %v948_v19  ;;  %v3041_v40 = vmul.f32 %v2745_v24, %v685_v6  ;;  %v1331_v27 = vmul.f32 %v1293_v17, %v1293_v17  ;;  %v1650_v39 = vadd.f32 %v1649_v33, %v1330_v18 }
 0x108   :  { %1801 = vrsqrt.f32 %v3024_v2  ;;  %v3046_v46 = vpop.eup %1795  ;;  %v1332_v61 = vmul.f32 %v1294_v29, %v1294_v29  ;;  %v1259_v5 = vmul.f32 %v1882_v3, %v958_v37  ;;  %v931_v22 = vmul.f32 %v3026_v12, %v930_v10 }
 0x109   :  { %1803 = vrsqrt.f32 %v3032_v32  ;;  %v1651_v21 = vadd.f32 %v1650_v39, %v1331_v27  ;;  %vm935_vm6 = vweird.f32 %v2975_v13  ;;  %v980_v60 = vmul.f32 %v3046_v46, %v2981_v52 }
 0x10a   :  { %vm985_vm7 = vweird.f32 %v2981_v52  ;;  %v3054_v50 = vpop.eup %1797  ;;  %v1296_v33 = vsub.f32 %v2423_v16, %v1258_v44  ;;  %v932_v26 = vmul.f32 0.5, %v931_v22  ;;  %v3058_v47 = vadd.f32 1e-10, %v2977_v58  ;;  %v338_v58 = vpop.xlane.xlu1 %337 }
 0x10b   :  { %v3060_v62 = vadd.f32 1e-10, %v340_v63  ;;  %v3062_v53 = vadd.f32 %v1651_v21, %v1332_v61  ;;  %v981_v11 = vmul.f32 %v3046_v46, %v980_v60  ;;  %v970_v41 = vmul.f32 %v3054_v50, %v3001_v57  ;;  %v1883_v63 = vld [vmem:[#allocation5 + $0x50] sm:$0xff] }
 0x10c   :  { %vm975_vm8 = vweird.f32 %v3001_v57  ;;  %v3068_v59 = vpop.eup %1799  ;;  %v3071_v34 = vsub.f32 %v2573_v0, %v1259_v5  ;;  %v933_v16 = vsub.f32 1.5, %v932_v26  ;;  %vm936_vm9 = vweird.f32 %v3026_v12 }
 0x10d   :  { %1805 = vrsqrt.f32 %v3058_v47  ;;  %v982_v17 = vmul.f32 0.5, %v981_v11  ;;  %vm986_vm10 = vweird.f32 %v3046_v46  ;;  %v971_v54 = vmul.f32 %v3054_v50, %v970_v41  ;;  %vm937_vm13 = vmor %vm935_vm6, %vm936_vm9  ;;  %v3103_v22 = vpop.xlane.xlu2 %345 }
 0x10e   :  { %v3075_v6 = vpop.eup %1801  ;;  %v960_v48 = vmul.f32 %v3068_v59, %v3022_v8  ;;  %vm965_vm11 = vweird.f32 %v3022_v8  ;;  %vm1015_vm12 = vweird.f32 %v3024_v2  ;;  %v1334_v28 = vmul.f32 %v1296_v33, %v1296_v33  ;;  %v3105_v21 = vpop.xlane.xlu0 %341  ;;  %vm3113_vm0 = vmor %vm985_vm7, %vm986_vm10 }
 0x10f   :  { %v3083_v0 = vpop.eup %1803  ;;  %v934_v29 = vmul.f32 %v3026_v12, %v933_v16  ;;  %v1010_v18 = vmul.f32 %v3075_v6, %v3024_v2  ;;  %1807 = vrsqrt.f32 %v3060_v62  ;;  %v983_v37 = vsub.f32 1.5, %v982_v17 }
 0x110   :  { %v972_v19 = vmul.f32 0.5, %v971_v54  ;;  %v961_v43 = vmul.f32 %v3068_v59, %v960_v48  ;;  %v1000_v44 = vmul.f32 %v3083_v0, %v3032_v32  ;;  %vm1005_vm14 = vweird.f32 %v3032_v32 }
 0x111   :  { %v938_v10 = vsel %vm937_vm13, %v3026_v12, %v934_v29  ;;  %vm976_vm15 = vweird.f32 %v3054_v50  ;;  %v1011_v27 = vmul.f32 %v3075_v6, %v1010_v18  ;;  %v3100_v39 = vadd.f32 1e-10, %v338_v58  ;;  %v1884_v18 = vld [vmem:[#allocation5 + $0x78] sm:$0xff] }
 0x112   :  { %v1257_v13 = vmul.f32 %v1883_v63, %v938_v10  ;;  %v984_v61 = vmul.f32 %v3046_v46, %v983_v37  ;;  %v973_v3 = vsub.f32 1.5, %v972_v19  ;;  %v962_v5 = vmul.f32 0.5, %v961_v43  ;;  %vm977_vm2 = vmor %vm975_vm8, %vm976_vm15  ;;  %v1885_v19 = vld [vmem:[#allocation5 + $0x70] sm:$0xff]  ;;  %v344_v10 = vpop.xlane.xlu1 %343 }
 0x113   :  { %v3107_v60 = vpop.eup %1805  ;;  %vm966_vm1 = vweird.f32 %v3068_v59  ;;  %v1012_v33 = vmul.f32 0.5, %v1011_v27  ;;  %v1001_v26 = vmul.f32 %v3083_v0, %v1000_v44  ;;  %1809 = vrsqrt.f32 %v3100_v39 }
 0x114   :  { %v1295_v11 = vsub.f32 %v2456_v9, %v1257_v13  ;;  %v988_v41 = vsel %vm3113_vm0, %v3046_v46, %v984_v61  ;;  %v974_v16 = vmul.f32 %v3054_v50, %v973_v3  ;;  %v963_v52 = vsub.f32 1.5, %v962_v5  ;;  %vm967_vm5 = vmor %vm965_vm11, %vm966_vm1  ;;  %v1886_v5 = vld [vmem:[#allocation5 + $0x68] sm:$0xff] }
 0x115   :  { %v3125_v58 = vpop.eup %1807  ;;  %v1013_v17 = vsub.f32 1.5, %v1012_v33  ;;  %vm1016_vm3 = vweird.f32 %v3075_v6  ;;  %v1002_v54 = vmul.f32 0.5, %v1001_v26  ;;  %v990_v9 = vmul.f32 %v3107_v60, %v3058_v47  ;;  %v352_v32 = vpop.xlane.xlu2 %351 }
 0x116   :  { %v1333_v48 = vmul.f32 %v1295_v11, %v1295_v11  ;;  %v978_v46 = vsel %vm977_vm2, %v3054_v50, %v974_v16  ;;  %v964_v29 = vmul.f32 %v3068_v59, %v963_v52  ;;  %vm1006_vm4 = vweird.f32 %v3083_v0  ;;  %vm3157_vm7 = vmor %vm1015_vm12, %vm1016_vm3  ;;  %v348_v16 = vpop.xlane.xlu0 %347 }
 0x117   :  { %v1262_v37 = vmul.f32 %v1884_v18, %v988_v41  ;;  %v1261_v43 = vmul.f32 %v1885_v19, %v978_v46  ;;  %v1014_v57 = vmul.f32 %v3075_v6, %v1013_v17  ;;  %v1003_v44 = vsub.f32 1.5, %v1002_v54  ;;  %vm3172_vm10 = vmor %vm1005_vm14, %vm1006_vm4  ;;  %v1887_v17 = vld [vmem:[#allocation5 + $0x90] sm:$0xff] }
 0x118   :  { %v1653_v27 = vadd.f32 %v3062_v53, %v1333_v48  ;;  %v968_v50 = vsel %vm967_vm5, %v3068_v59, %v964_v29  ;;  %v991_v63 = vmul.f32 %v3107_v60, %v990_v9  ;;  %v1040_v13 = vmul.f32 %v3125_v58, %v3060_v62  ;;  %v1888_v29 = vld [vmem:[#allocation5 + $0x88] sm:$0xff] }
 0x119   :  { %v3147_v61 = vpop.eup %1809  ;;  %vm688_vm6 = vweird.f32 %v2745_v24  ;;  %v1335_v8 = vmul.f32 %v3071_v34, %v3071_v34  ;;  %v1299_v3 = vsub.f32 %v2519_v45, %v1261_v43  ;;  %v1260_v12 = vmul.f32 %v1886_v5, %v968_v50 }
 0x11a   :  { %vm995_vm8 = vweird.f32 %v3058_v47  ;;  %v1654_v59 = vadd.f32 %v1653_v27, %v1334_v28  ;;  %v1018_v33 = vsel %vm3157_vm7, %v3075_v6, %v1014_v57  ;;  %v1004_v34 = vmul.f32 %v3083_v0, %v1003_v44 }
 0x11b   :  { %v992_v45 = vmul.f32 0.5, %v991_v63  ;;  %vm687_vm9 = vweird.f32 %v2670_v30  ;;  %v1298_v26 = vsub.f32 %v2527_v14, %v1260_v12  ;;  %vm996_vm11 = vweird.f32 %v3107_v60  ;;  %v1889_v63 = vld [vmem:[#allocation5 + $0x80] sm:$0xff] }
 0x11c   :  { %v1041_v28 = vmul.f32 %v3125_v58, %v1040_v13  ;;  %vm1045_vm12 = vweird.f32 %v3060_v62  ;;  %v1300_v6 = vsub.f32 %v2641_v31, %v1262_v37  ;;  %v1655_v11 = vadd.f32 %v1654_v59, %v1335_v8  ;;  %vm997_vm14 = vmor %vm995_vm8, %vm996_vm11  ;;  %v350_v8 = vpop.xlane.xlu1 %349  ;;  %v1890_v62 = vld [vmem:[#allocation5 + $0xa8] sm:$0xff] }
 0x11d   :  { %v1008_v14 = vsel %vm3172_vm10, %v3083_v0, %v1004_v34  ;;  %v993_v41 = vsub.f32 1.5, %v992_v45  ;;  %vm1035_vm13 = vweird.f32 %v3100_v39  ;;  %v1336_v52 = vmul.f32 %v1298_v26, %v1298_v26  ;;  %vm3218_vm1 = vmor %vm687_vm9, %vm688_vm6  ;;  %v356_v2 = vpop.xlane.xlu2 %355 }
 0x11e   :  { %v1265_v54 = vmul.f32 %v1887_v17, %v1018_v33  ;;  %v1042_v9 = vmul.f32 0.5, %v1041_v28  ;;  %v1030_v48 = vmul.f32 %v3147_v61, %v3100_v39  ;;  %v1337_v46 = vmul.f32 %v1299_v3, %v1299_v3  ;;  %v3238_v28 = vpop.xlane.xlu0 %353 }
 0x11f   :  { %v1264_v31 = vmul.f32 %v1888_v29, %v1008_v14  ;;  %v994_v18 = vmul.f32 %v3107_v60, %v993_v41  ;;  %v3188_v37 = vadd.f32 1e-10, %v3044_v15  ;;  %v1656_v0 = vadd.f32 %v1655_v11, %v1336_v52  ;;  %v1891_v52 = vld [vmem:[#allocation5 + $0xa0] sm:$0xff] }
 0x120   :  { %v1043_v19 = vsub.f32 1.5, %v1042_v9  ;;  %vm1046_vm15 = vweird.f32 %v3125_v58  ;;  %v1031_v43 = vmul.f32 %v3147_v61, %v1030_v48  ;;  %v1338_v57 = vmul.f32 %v1300_v6, %v1300_v6 }
 0x121   :  { %v998_v44 = vsel %vm997_vm14, %v3107_v60, %v994_v18  ;;  %1811 = vrsqrt.f32 %v3188_v37  ;;  %v3199_v27 = vadd.f32 1e-10, %v3103_v22  ;;  %v1657_v15 = vadd.f32 %v1656_v0, %v1337_v46  ;;  %vm1047_vm0 = vmor %vm1045_vm12, %vm1046_vm15 }
 0x122   :  { %v1303_v50 = vsub.f32 %v2682_v20, %v1265_v54  ;;  %v1263_v13 = vmul.f32 %v1889_v63, %v998_v44  ;;  %v1044_v47 = vmul.f32 %v3125_v58, %v1043_v19  ;;  %v1302_v3 = vsub.f32 %v2589_v49, %v1264_v31 }
 0x123   :  { %v1032_v5 = vmul.f32 0.5, %v1031_v43  ;;  %1813 = vrsqrt.f32 %v3199_v27  ;;  %v3207_v60 = vadd.f32 1e-10, %v344_v10  ;;  %v1658_v22 = vadd.f32 %v1657_v15, %v1338_v57 }
 0x124   :  { %v1301_v12 = vsub.f32 %v2626_v51, %v1263_v13  ;;  %v1048_v20 = vsel %vm1047_vm0, %v3125_v58, %v1044_v47  ;;  %v3212_v53 = vadd.f32 1e-10, %v3105_v21  ;;  %vm1036_vm2 = vweird.f32 %v3147_v61  ;;  %v3269_v18 = vpop.xlane.xlu1 %241 }
 0x125   :  { %v1268_v59 = vmul.f32 %v1890_v62, %v1048_v20  ;;  %v1033_v10 = vsub.f32 1.5, %v1032_v5  ;;  %1815 = vrsqrt.f32 %v3207_v60  ;;  %v690_v51 = vsel %vm3218_vm1, %v2745_v24, %v3041_v40  ;;  %vm1037_vm3 = vmor %vm1035_vm13, %vm1036_vm2 }
 0x126   :  { %v1339_v21 = vmul.f32 %v1301_v12, %v1301_v12  ;;  %1817 = vrsqrt.f32 %v3212_v53  ;;  %v3229_v30 = vadd.f32 1e-10, %v352_v32  ;;  %v1340_v33 = vmul.f32 %v1302_v3, %v1302_v3 }
 0x127   :  { %v3231_v58 = vpop.eup %1811  ;;  %v1034_v34 = vmul.f32 %v3147_v61, %v1033_v10  ;;  %v3234_v45 = vadd.f32 1e-10, %v350_v8  ;;  %v3236_v26 = vadd.f32 1e-10, %v348_v16  ;;  %v1306_v11 = vsub.f32 %v2761_v55, %v1268_v59  ;;  %v3303_v59 = vpop.xlane.xlu2 %245 }
 0x128   :  { %v1659_v6 = vadd.f32 %v1658_v22, %v1339_v21  ;;  %v1020_v14 = vmul.f32 %v3231_v58, %v3188_v37  ;;  %1819 = vrsqrt.f32 %v3229_v30  ;;  %v1341_v32 = vmul.f32 %v1303_v50, %v1303_v50  ;;  %v3305_v10 = vpop.xlane.xlu0 %243 }
 0x129   :  { %v3248_v41 = vpop.eup %1813  ;;  %v1038_v16 = vsel %vm1037_vm3, %v3147_v61, %v1034_v34  ;;  %vm1025_vm4 = vweird.f32 %v3188_v37  ;;  %1821 = vrsqrt.f32 %v3234_v45  ;;  %vm1026_vm5 = vweird.f32 %v3231_v58 }
 0x12a   :  { %v1660_v55 = vadd.f32 %v1659_v6, %v1340_v33  ;;  %v1267_v17 = vmul.f32 %v1891_v52, %v1038_v16  ;;  %v1021_v39 = vmul.f32 %v3231_v58, %v1020_v14  ;;  %v1070_v54 = vmul.f32 %v3248_v41, %v3199_v27  ;;  %vm1027_vm14 = vmor %vm1025_vm4, %vm1026_vm5 }
 0x12b   :  { %v3256_v9 = vpop.eup %1815  ;;  %vm1075_vm6 = vweird.f32 %v3199_v27  ;;  %vm1065_vm7 = vweird.f32 %v3207_v60  ;;  %1823 = vrsqrt.f32 %v3236_v26  ;;  %v3264_v48 = vmul.f32 %v1306_v11, %v1306_v11 }
 0x12c   :  { %v3262_v61 = vpop.eup %1817  ;;  %v3266_v46 = vadd.f32 %v1660_v55, %v1341_v32  ;;  %v1022_v29 = vmul.f32 0.5, %v1021_v39  ;;  %v1071_v31 = vmul.f32 %v3248_v41, %v1070_v54  ;;  %vm1076_vm8 = vweird.f32 %v3248_v41 }
 0x12d   :  { %v1060_v0 = vmul.f32 %v3256_v9, %v3207_v60  ;;  %v1050_v19 = vmul.f32 %v3262_v61, %v3212_v53  ;;  %vm1055_vm9 = vweird.f32 %v3212_v53  ;;  %vm1105_vm10 = vweird.f32 %v3229_v30  ;;  %vm3316_vm15 = vmor %vm1075_vm6, %vm1076_vm8  ;;  %v1894_v53 = vld [vmem:[#allocation5 + $0xb8] sm:$0xff] }
 0x12e   :  { %v3278_v43 = vpop.eup %1819  ;;  %v1305_v57 = vsub.f32 %v2644_v42, %v1267_v17  ;;  %v1023_v44 = vsub.f32 1.5, %v1022_v29  ;;  %v1072_v15 = vmul.f32 0.5, %v1071_v31  ;;  %vm1095_vm11 = vweird.f32 %v3234_v45 }
 0x12f   :  { %v3282_v50 = vadd.f32 1e-10, %v356_v2  ;;  %v3284_v63 = vpop.eup %1821  ;;  %v1061_v13 = vmul.f32 %v3256_v9, %v1060_v0  ;;  %vm1066_vm12 = vweird.f32 %v3256_v9  ;;  %v1051_v47 = vmul.f32 %v3262_v61, %v1050_v19  ;;  %v1892_v2 = vld [vmem:[#allocation5 + $0x98] sm:$0xff]  ;;  %v3341_v0 = vpop.xlane.xlu1 %357 }
 0x130   :  { %v1100_v8 = vmul.f32 %v3278_v43, %v3229_v30  ;;  %v1024_v3 = vmul.f32 %v3231_v58, %v1023_v44  ;;  %v1073_v42 = vsub.f32 1.5, %v1072_v15  ;;  %vm1056_vm13 = vweird.f32 %v3262_v61  ;;  %vm3330_vm0 = vmor %vm1065_vm7, %vm1066_vm12 }
 0x131   :  { %v1090_v5 = vmul.f32 %v3284_v63, %v3234_v45  ;;  %v3295_v22 = vpop.eup %1823  ;;  %v1062_v12 = vmul.f32 0.5, %v1061_v13  ;;  %v1052_v20 = vmul.f32 0.5, %v1051_v47  ;;  %1825 = vrsqrt.f32 %v3282_v50  ;;  %vm1057_vm3 = vmor %vm1055_vm9, %vm1056_vm13 }
 0x132   :  { %v1101_v62 = vmul.f32 %v3278_v43, %v1100_v8  ;;  %v1028_v21 = vsel %vm1027_vm14, %v3231_v58, %v1024_v3  ;;  %v1074_v33 = vmul.f32 %v3248_v41, %v1073_v42  ;;  %v1080_v37 = vmul.f32 %v3295_v22, %v3236_v26  ;;  %v1895_v8 = vld [vmem:[#allocation5 + $0xb0] sm:$0xff] }
 0x133   :  { %v1091_v34 = vmul.f32 %v3284_v63, %v1090_v5  ;;  %v1266_v6 = vmul.f32 %v1892_v2, %v1028_v21  ;;  %v1063_v14 = vsub.f32 1.5, %v1062_v12  ;;  %v1053_v32 = vsub.f32 1.5, %v1052_v20  ;;  %v362_v2 = vpop.xlane.xlu2 %361 }
 0x134   :  { %v1102_v58 = vmul.f32 0.5, %v1101_v62  ;;  %v1343_v16 = vmul.f32 %v1305_v57, %v1305_v57  ;;  %v1078_v55 = vsel %vm3316_vm15, %v3248_v41, %v1074_v33  ;;  %v1081_v17 = vmul.f32 %v3295_v22, %v1080_v37  ;;  %v1893_v57 = vld [vmem:[#allocation5 + $0xc0] sm:$0xff] }
 0x135   :  { %v1092_v52 = vmul.f32 0.5, %v1091_v34  ;;  %v1304_v39 = vsub.f32 %v2680_v23, %v1266_v6  ;;  %v1064_v54 = vmul.f32 %v3256_v9, %v1063_v14  ;;  %v1054_v29 = vmul.f32 %v3262_v61, %v1053_v32  ;;  %v360_v6 = vpop.xlane.xlu0 %359  ;;  %v1898_v14 = vld [vmem:[#allocation5 + $0xd0] sm:$0xff] }
 0x136   :  { %vm1106_vm2 = vweird.f32 %v3278_v43  ;;  %v1103_v23 = vsub.f32 1.5, %v1102_v58  ;;  %vm1096_vm4 = vweird.f32 %v3284_v63  ;;  %v1082_v31 = vmul.f32 0.5, %v1081_v17  ;;  %v1899_v58 = vld [vmem:[#allocation5 + $0xc8] sm:$0xff] }
 0x137   :  { %v1093_v41 = vsub.f32 1.5, %v1092_v52  ;;  %v3343_v60 = vpop.eup %1825  ;;  %v1342_v19 = vmul.f32 %v1304_v39, %v1304_v39  ;;  %v1271_v44 = vmul.f32 %v1893_v57, %v1078_v55  ;;  %v1068_v15 = vsel %vm3330_vm0, %v3256_v9, %v1064_v54  ;;  %vm3354_vm5 = vmor %vm1105_vm10, %vm1106_vm2 }
 0x138   :  { %v1058_v13 = vsel %vm1057_vm3, %v3262_v61, %v1054_v29  ;;  %v1270_v47 = vmul.f32 %v1894_v53, %v1068_v15  ;;  %v1104_v42 = vmul.f32 %v3278_v43, %v1103_v23  ;;  %vm697_vm6 = vweird.f32 %v2621_v7  ;;  %vm3366_vm8 = vmor %vm1095_vm11, %vm1096_vm4 }
 0x139   :  { %v1269_v3 = vmul.f32 %v1895_v8, %v1058_v13  ;;  %v1094_v12 = vmul.f32 %v3284_v63, %v1093_v41  ;;  %vm698_vm7 = vweird.f32 %v2704_v36  ;;  %v1662_v9 = vadd.f32 %v3266_v46, %v1342_v19 }
 0x13a   :  { %v1083_v30 = vsub.f32 1.5, %v1082_v31  ;;  %vm1086_vm9 = vweird.f32 %v3295_v22  ;;  %v1120_v20 = vmul.f32 %v3343_v60, %v3282_v50  ;;  %v1108_v46 = vsel %vm3354_vm5, %v3278_v43, %v1104_v42  ;;  %vm3425_vm13 = vmor %vm697_vm6, %vm698_vm7  ;;  %v1900_v42 = vld [vmem:[#allocation2 + $0xe0] sm:$0xff] }
 0x13b   :  { %v1307_v62 = vsub.f32 %v2747_v38, %v1269_v3  ;;  %v1098_v45 = vsel %vm3366_vm8, %v3284_v63, %v1094_v12  ;;  %vm1085_vm10 = vweird.f32 %v3236_v26  ;;  %v1663_v21 = vadd.f32 %v1662_v9, %v1343_v16  ;;  %v1896_v38 = vld [vmem:[#allocation2 + $0xd8] sm:$0xff]  ;;  %v252_v7 = vpop.xlane.xlu2 %251 }
 0x13c   :  { %v1309_v33 = vsub.f32 %v2997_v25, %v1271_v44  ;;  %v1308_v34 = vsub.f32 %v2709_v1, %v1270_v47  ;;  %v1084_v37 = vmul.f32 %v3295_v22, %v1083_v30  ;;  %v1236_v43 = vmul.f32 %v1896_v38, %v690_v51  ;;  %vm1087_vm11 = vmor %vm1085_vm10, %vm1086_vm9  ;;  %v1897_v25 = vld [vmem:[#allocation5 + $0xd8] sm:$0xff] }
 0x13d   :  { %v1345_v11 = vmul.f32 %v1307_v62, %v1307_v62  ;;  %v1121_v26 = vmul.f32 %v3343_v60, %v1120_v20  ;;  %vm1125_vm12 = vweird.f32 %v3282_v50  ;;  %v1664_v1 = vadd.f32 %v1663_v21, %v3264_v48  ;;  %v3443_v15 = vpop.xlane.xlu0 %249  ;;  %v1901_v62 = vld [vmem:[#allocation5 + $0xe8] sm:$0xff] }
 0x13e   :  { %v1274_v63 = vmul.f32 %v1897_v25, %v1108_v46  ;;  %v1273_v32 = vmul.f32 %v1898_v14, %v1098_v45  ;;  %v1088_v49 = vsel %vm1087_vm11, %v3295_v22, %v1084_v37  ;;  %v3396_v40 = vadd.f32 1e-10, %v3269_v18  ;;  %v248_v22 = vpop.xlane.xlu1 %247 }
 0x13f   :  { %v1272_v16 = vmul.f32 %v1899_v58, %v1088_v49  ;;  %v1122_v24 = vmul.f32 0.5, %v1121_v26  ;;  %v3399_v51 = vadd.f32 1e-10, %v3238_v28  ;;  %v1347_v55 = vmul.f32 %v1309_v33, %v1309_v33 }
 0x140   :  { %v1346_v52 = vmul.f32 %v1308_v34, %v1308_v34  ;;  %v1665_v17 = vadd.f32 %v1664_v1, %v1345_v11  ;;  %v3402_v48 = vadd.f32 1e-10, %v3303_v59  ;;  %vm1126_vm1 = vweird.f32 %v3343_v60 }
 0x141   :  { %v1310_v39 = vsub.f32 %v2815_v35, %v1272_v16  ;;  %v1123_v54 = vsub.f32 1.5, %v1122_v24  ;;  %1827 = vrsqrt.f32 %v3396_v40  ;;  %v1312_v18 = vsub.f32 %v1236_v43, %v1274_v63  ;;  %vm3438_vm14 = vmor %vm1125_vm12, %vm1126_vm1 }
 0x142   :  { %v1666_v27 = vadd.f32 %v1665_v17, %v1346_v52  ;;  %v1311_v29 = vsub.f32 %v2808_v56, %v1273_v32  ;;  %1829 = vrsqrt.f32 %v3399_v51  ;;  %v3412_v59 = vadd.f32 1e-10, %v3341_v0 }
 0x143   :  { %v1348_v28 = vmul.f32 %v1310_v39, %v1310_v39  ;;  %v1124_v23 = vmul.f32 %v3343_v60, %v1123_v54  ;;  %1831 = vrsqrt.f32 %v3402_v48  ;;  %v3415_v41 = vadd.f32 1e-10, %v3305_v10 }
 0x144   :  { %v1667_v35 = vadd.f32 %v1666_v27, %v1347_v55  ;;  %v3417_v31 = vadd.f32 1e-10, %v362_v2  ;;  %v3419_v19 = vadd.f32 1e-10, %v248_v22  ;;  %1833 = vrsqrt.f32 %v3412_v59 }
 0x145   :  { %v700_v10 = vsel %vm3425_vm13, %v2704_v36, %v3035_v4  ;;  %v1349_v0 = vmul.f32 %v1311_v29, %v1311_v29  ;;  %1835 = vrsqrt.f32 %v3415_v41  ;;  %v1350_v53 = vmul.f32 %v1312_v18, %v1312_v18  ;;  %v3508_v52 = vpop.xlane.xlu0 %365 }
 0x146   :  { %v1668_v57 = vadd.f32 %v1667_v35, %v1348_v28  ;;  %v1128_v36 = vsel %vm3438_vm14, %v3343_v60, %v1124_v23  ;;  %1837 = vrsqrt.f32 %v3417_v31  ;;  %v3456_v8 = vadd.f32 1e-10, %v360_v6  ;;  %v364_v21 = vpop.xlane.xlu1 %363 }
 0x147   :  { %v3445_v13 = vpop.eup %1827  ;;  %1839 = vrsqrt.f32 %v3419_v19  ;;  %v3460_v5 = vmul.f32 %v1900_v42, %v700_v10  ;;  %vm707_vm15 = vweird.f32 %v3396_v40  ;;  %v3465_v12 = vadd.f32 1e-10, %v252_v7  ;;  %v1902_v10 = vld [vmem:[#allocation5 + $0xe0] sm:$0xff] }
 0x148   :  { %v3451_v4 = vpop.eup %1829  ;;  %v1669_v50 = vadd.f32 %v1668_v57, %v1349_v0  ;;  %v702_v47 = vmul.f32 %v3445_v13, %v3396_v40  ;;  %vm1115_vm0 = vweird.f32 %v3399_v51  ;;  %v3475_v46 = vmul.f32 %v1901_v62, %v1128_v36 }
 0x149   :  { %v3458_v3 = vpop.eup %1831  ;;  %v1110_v60 = vmul.f32 %v3451_v4, %v3399_v51  ;;  %vm708_vm2 = vweird.f32 %v3445_v13  ;;  %vm1135_vm3 = vweird.f32 %v3412_v59  ;;  %1841 = vrsqrt.f32 %v3456_v8  ;;  %v1903_v51 = vld [vmem:[#allocation2 + $0xe8] sm:$0xff] }
 0x14a   :  { %v703_v9 = vmul.f32 %v3445_v13, %v702_v47  ;;  %v3468_v61 = vadd.f32 %v1669_v50, %v1350_v53  ;;  %v722_v30 = vmul.f32 %v3458_v3, %v3402_v48  ;;  %v3473_v20 = vpop.eup %1833  ;;  %vm1116_vm4 = vweird.f32 %v3451_v4  ;;  %vm3514_vm9 = vmor %vm707_vm15, %vm708_vm2  ;;  %v368_v50 = vpop.xlane.xlu2 %367 }
 0x14b   :  { %v1111_v45 = vmul.f32 %v3451_v4, %v1110_v60  ;;  %v3480_v33 = vpop.eup %1835  ;;  %v1130_v2 = vmul.f32 %v3473_v20, %v3412_v59  ;;  %vm717_vm5 = vweird.f32 %v3415_v41  ;;  %vm1155_vm6 = vweird.f32 %v3417_v31  ;;  %vm1117_vm11 = vmor %vm1115_vm0, %vm1116_vm4 }
 0x14c   :  { %v704_v34 = vmul.f32 0.5, %v703_v9  ;;  %v723_v37 = vmul.f32 %v3458_v3, %v722_v30  ;;  %v3486_v6 = vpop.eup %1837  ;;  %v712_v43 = vmul.f32 %v3480_v33, %v3415_v41  ;;  %1843 = vrsqrt.f32 %v3465_v12 }
 0x14d   :  { %v1112_v38 = vmul.f32 0.5, %v1111_v45  ;;  %v3494_v11 = vpop.eup %1839  ;;  %v1131_v1 = vmul.f32 %v3473_v20, %v1130_v2  ;;  %v1150_v25 = vmul.f32 %v3486_v6, %v3417_v31  ;;  %vm737_vm7 = vweird.f32 %v3419_v19 }
 0x14e   :  { %v705_v26 = vsub.f32 1.5, %v704_v34  ;;  %v3500_v63 = vadd.f32 1e-10, %v364_v21  ;;  %vm1136_vm8 = vweird.f32 %v3473_v20  ;;  %v713_v32 = vmul.f32 %v3480_v33, %v712_v43  ;;  %v254_v47 = vpop.xlane.xlu1 %253  ;;  %v1905_v34 = vld [vmem:[#allocation2 + $0xf0] sm:$0xff] }
 0x14f   :  { %v1113_v14 = vsub.f32 1.5, %v1112_v38  ;;  %v732_v49 = vmul.f32 %v3494_v11, %v3419_v19  ;;  %v724_v16 = vmul.f32 0.5, %v723_v37  ;;  %v1132_v24 = vmul.f32 0.5, %v1131_v1  ;;  %v3521_v27 = vpop.eup %1841  ;;  %vm3540_vm1 = vmor %vm1135_vm3, %vm1136_vm8 }
 0x150   :  { %v706_v58 = vmul.f32 %v3445_v13, %v705_v26  ;;  %v1151_v55 = vmul.f32 %v3486_v6, %v1150_v25  ;;  %v714_v54 = vmul.f32 0.5, %v713_v32  ;;  %vm718_vm10 = vweird.f32 %v3480_v33 }
 0x151   :  { %v1114_v39 = vmul.f32 %v3451_v4, %v1113_v14  ;;  %v733_v22 = vmul.f32 %v3494_v11, %v732_v49  ;;  %v1133_v40 = vsub.f32 1.5, %v1132_v24  ;;  %1845 = vrsqrt.f32 %v3500_v63  ;;  %vm719_vm14 = vmor %vm717_vm5, %vm718_vm10  ;;  %v256_v14 = vpop.xlane.xlu0 %255 }
 0x152   :  { %v710_v18 = vsel %vm3514_vm9, %v3445_v13, %v706_v58  ;;  %v1152_v29 = vmul.f32 0.5, %v1151_v55  ;;  %v3531_v28 = vpop.eup %1843  ;;  %v715_v35 = vsub.f32 1.5, %v714_v54  ;;  %vm1156_vm12 = vweird.f32 %v3486_v6  ;;  %v1906_v58 = vld [vmem:[#allocation5 + $0x100] sm:$0xff] }
 0x153   :  { %v1118_v23 = vsel %vm1117_vm11, %v3451_v4, %v1114_v39  ;;  %v734_v56 = vmul.f32 0.5, %v733_v22  ;;  %v725_v57 = vsub.f32 1.5, %v724_v16  ;;  %v1134_v44 = vmul.f32 %v3473_v20, %v1133_v40  ;;  %vm3566_vm0 = vmor %vm1155_vm6, %vm1156_vm12 }
 0x154   :  { %v1275_v0 = vmul.f32 %v1902_v10, %v1118_v23  ;;  %v1153_v7 = vsub.f32 1.5, %v1152_v29  ;;  %v1238_v13 = vmul.f32 %v1903_v51, %v710_v18  ;;  %v716_v36 = vmul.f32 %v3480_v33, %v715_v35 }
 0x155   :  { %v735_v4 = vsub.f32 1.5, %v734_v56  ;;  %vm738_vm13 = vweird.f32 %v3494_v11  ;;  %v1138_v60 = vsel %vm3540_vm1, %v3473_v20, %v1134_v44  ;;  %v1140_v9 = vmul.f32 %v3521_v27, %v3456_v8  ;;  %v1904_v20 = vld [vmem:[#allocation5 + $0xf0] sm:$0xff] }
 0x156   :  { %v1313_v42 = vsub.f32 %v3460_v5, %v1275_v0  ;;  %v1154_v59 = vmul.f32 %v3486_v6, %v1153_v7  ;;  %vm727_vm15 = vweird.f32 %v3402_v48  ;;  %v720_v30 = vsel %vm719_vm14, %v3480_v33, %v716_v36  ;;  %vm3580_vm3 = vmor %vm737_vm7, %vm738_vm13  ;;  %v370_v23 = vpop.xlane.xlu1 %369  ;;  %v1908_v0 = vld [vmem:[#allocation5 + $0xf8] sm:$0xff] }
 0x157   :  { %v736_v5 = vmul.f32 %v3494_v11, %v735_v4  ;;  %v3560_v62 = vpop.eup %1845  ;;  %v1277_v21 = vmul.f32 %v1904_v20, %v1138_v60  ;;  %v1239_v37 = vmul.f32 %v1905_v34, %v720_v30  ;;  %v1141_v2 = vmul.f32 %v3521_v27, %v1140_v9 }
 0x158   :  { %v1351_v45 = vmul.f32 %v1313_v42, %v1313_v42  ;;  %v726_v33 = vmul.f32 %v3458_v3, %v725_v57  ;;  %vm728_vm2 = vweird.f32 %v3458_v3  ;;  %v1158_v38 = vsel %vm3566_vm0, %v3486_v6, %v1154_v59 }
 0x159   :  { %v752_v43 = vmul.f32 %v3531_v28, %v3465_v12  ;;  %v1314_v26 = vsub.f32 %v1238_v13, %v3475_v46  ;;  %v740_v25 = vsel %vm3580_vm3, %v3494_v11, %v736_v5  ;;  %v1142_v6 = vmul.f32 0.5, %v1141_v2  ;;  %vm3601_vm7 = vmor %vm727_vm15, %vm728_vm2  ;;  %v1907_v11 = vld [vmem:[#allocation2 + $0x100] sm:$0xff]  ;;  %v1910_v2 = vld [vmem:[#allocation2 + $0x110] sm:$0xff] }
 0x15a   :  { %v1671_v1 = vadd.f32 %v3468_v61, %v1351_v45  ;;  %vm1145_vm4 = vweird.f32 %v3456_v8  ;;  %vm757_vm5 = vweird.f32 %v3465_v12  ;;  %v1160_v32 = vmul.f32 %v3560_v62, %v3500_v63 }
 0x15b   :  { %v753_v19 = vmul.f32 %v3531_v28, %v752_v43  ;;  %v1315_v49 = vsub.f32 %v1239_v37, %v1277_v21  ;;  %v1279_v46 = vmul.f32 %v1906_v58, %v1158_v38  ;;  %v1143_v16 = vsub.f32 1.5, %v1142_v6 }
 0x15c   :  { %vm1146_vm6 = vweird.f32 %v3521_v27  ;;  %v1241_v24 = vmul.f32 %v1907_v11, %v740_v25  ;;  %v1161_v17 = vmul.f32 %v3560_v62, %v1160_v32  ;;  %v3607_v39 = vadd.f32 1e-10, %v3443_v15  ;;  %v258_v15 = vpop.xlane.xlu2 %257  ;;  %v1911_v25 = vld [vmem:[#allocation5 + $0x108] sm:$0xff] }
 0x15d   :  { %v754_v55 = vmul.f32 0.5, %v753_v19  ;;  %v1352_v54 = vmul.f32 %v1314_v26, %v1314_v26  ;;  %v730_v22 = vsel %vm3601_vm7, %v3458_v3, %v726_v33  ;;  %v1144_v18 = vmul.f32 %v3521_v27, %v1143_v16  ;;  %vm1147_vm8 = vmor %vm1145_vm4, %vm1146_vm6 }
 0x15e   :  { %v3613_v48 = vadd.f32 1e-10, %v368_v50  ;;  %vm758_vm9 = vweird.f32 %v3531_v28  ;;  %v1162_v29 = vmul.f32 0.5, %v1161_v17  ;;  %1847 = vrsqrt.f32 %v3607_v39 }
 0x15f   :  { %v755_v40 = vsub.f32 1.5, %v754_v55  ;;  %v1353_v35 = vmul.f32 %v1315_v49, %v1315_v49  ;;  %v1148_v56 = vsel %vm1147_vm8, %v3521_v27, %v1144_v18  ;;  %v3621_v3 = vadd.f32 1e-10, %v254_v47  ;;  %v1909_v27 = vld [vmem:[#allocation2 + $0xf8] sm:$0xff]  ;;  %vm3643_vm12 = vmor %vm757_vm5, %vm758_vm9 }
 0x160   :  { %1849 = vrsqrt.f32 %v3613_v48  ;;  %v1317_v10 = vsub.f32 %v1241_v24, %v1279_v46  ;;  %v1278_v57 = vmul.f32 %v1908_v0, %v1148_v56  ;;  %v1163_v8 = vsub.f32 1.5, %v1162_v29  ;;  %v1912_v0 = vld [vmem:[#allocation2 + $0x108] sm:$0xff] }
 0x161   :  { %v3624_v44 = vadd.f32 1e-10, %v3508_v52  ;;  %v756_v7 = vmul.f32 %v3531_v28, %v755_v40  ;;  %1851 = vrsqrt.f32 %v3621_v3  ;;  %v3628_v51 = vadd.f32 1e-10, %v258_v15  ;;  %v372_v52 = vpop.xlane.xlu0 %371 }
 0x162   :  { %v3630_v13 = vadd.f32 1e-10, %v370_v23  ;;  %v1240_v53 = vmul.f32 %v1909_v27, %v730_v22  ;;  %v1672_v36 = vadd.f32 %v1671_v1, %v1352_v54  ;;  %v1164_v4 = vmul.f32 %v3560_v62, %v1163_v8 }
 0x163   :  { %1853 = vrsqrt.f32 %v3624_v44  ;;  %vm1165_vm10 = vweird.f32 %v3500_v63  ;;  %vm1166_vm11 = vweird.f32 %v3560_v62  ;;  %v3650_v59 = vmul.f32 %v1317_v10, %v1317_v10 }
 0x164   :  { %1855 = vrsqrt.f32 %v3628_v51  ;;  %v3637_v50 = vpop.eup %1847  ;;  %v1673_v47 = vadd.f32 %v1672_v36, %v1353_v35  ;;  %v1316_v42 = vsub.f32 %v1240_v53, %v1278_v57  ;;  %v760_v9 = vsel %vm3643_vm12, %v3531_v28, %v756_v7  ;;  %vm3659_vm1 = vmor %vm1165_vm10, %vm1166_vm11 }
 0x165   :  { %1857 = vrsqrt.f32 %v3630_v13  ;;  %v742_v30 = vmul.f32 %v3637_v50, %v3607_v39  ;;  %v3657_v5 = vadd.f32 1e-10, %v256_v14  ;;  %vm747_vm13 = vweird.f32 %v3607_v39 }
 0x166   :  { %v3648_v63 = vpop.eup %1849  ;;  %vm1185_vm14 = vweird.f32 %v3613_v48  ;;  %v3667_v20 = vadd.f32 1e-10, %v372_v52  ;;  %v1168_v28 = vsel %vm3659_vm1, %v3560_v62, %v1164_v4  ;;  %vm767_vm15 = vweird.f32 %v3621_v3 }
 0x167   :  { %v1180_v45 = vmul.f32 %v3648_v63, %v3613_v48  ;;  %v3669_v21 = vpop.eup %1851  ;;  %v743_v34 = vmul.f32 %v3637_v50, %v742_v30  ;;  %1859 = vrsqrt.f32 %v3657_v5  ;;  %v1354_v41 = vmul.f32 %v1316_v42, %v1316_v42 }
 0x168   :  { %v3679_v33 = vmul.f32 %v1910_v2, %v760_v9  ;;  %v762_v31 = vmul.f32 %v3669_v21, %v3621_v3  ;;  %vm1175_vm0 = vweird.f32 %v3624_v44  ;;  %vm1195_vm2 = vweird.f32 %v3630_v13 }
 0x169   :  { %v3677_v37 = vpop.eup %1853  ;;  %v1181_v38 = vmul.f32 %v3648_v63, %v1180_v45  ;;  %v744_v62 = vmul.f32 0.5, %v743_v34  ;;  %1861 = vrsqrt.f32 %v3667_v20  ;;  %v1280_v6 = vmul.f32 %v1911_v25, %v1168_v28  ;;  %v1914_v45 = vld [vmem:[#allocation5 + $0x118] sm:$0xff]  ;;  %v1916_v25 = vld [vmem:[#allocation5 + $0x120] sm:$0xff] }
 0x16a   :  { %v3684_v43 = vpop.eup %1855  ;;  %v1170_v26 = vmul.f32 %v3677_v37, %v3624_v44  ;;  %v763_v19 = vmul.f32 %v3669_v21, %v762_v31  ;;  %vm748_vm3 = vweird.f32 %v3637_v50  ;;  %vm1186_vm4 = vweird.f32 %v3648_v63 }
 0x16b   :  { %v3691_v1 = vpop.eup %1857  ;;  %v1182_v14 = vmul.f32 0.5, %v1181_v38  ;;  %v782_v32 = vmul.f32 %v3684_v43, %v3628_v51  ;;  %v745_v49 = vsub.f32 1.5, %v744_v62  ;;  %vm787_vm5 = vweird.f32 %v3628_v51  ;;  %vm749_vm7 = vmor %vm747_vm13, %vm748_vm3 }
 0x16c   :  { %v1171_v58 = vmul.f32 %v3677_v37, %v1170_v26  ;;  %v1190_v46 = vmul.f32 %v3691_v1, %v3630_v13  ;;  %v764_v61 = vmul.f32 0.5, %v763_v19  ;;  %vm768_vm6 = vweird.f32 %v3669_v21  ;;  %vm3721_vm9 = vmor %vm1185_vm14, %vm1186_vm4  ;;  %v1915_v13 = vld [vmem:[#allocation2 + $0x118] sm:$0xff] }
 0x16d   :  { %v1183_v16 = vsub.f32 1.5, %v1182_v14  ;;  %v783_v11 = vmul.f32 %v3684_v43, %v782_v32  ;;  %v3703_v24 = vpop.eup %1859  ;;  %v746_v55 = vmul.f32 %v3637_v50, %v745_v49  ;;  %vm1176_vm8 = vweird.f32 %v3677_v37  ;;  %vm3731_vm11 = vmor %vm767_vm15, %vm768_vm6 }
 0x16e   :  { %v1172_v17 = vmul.f32 0.5, %v1171_v58  ;;  %v1191_v54 = vmul.f32 %v3691_v1, %v1190_v46  ;;  %v765_v18 = vsub.f32 1.5, %v764_v61  ;;  %v772_v29 = vmul.f32 %v3703_v24, %v3657_v5  ;;  %vm1177_vm12 = vmor %vm1175_vm0, %vm1176_vm8  ;;  %v1917_v58 = vld [vmem:[#allocation2 + $0x120] sm:$0xff] }
 0x16f   :  { %v1184_v22 = vmul.f32 %v3648_v63, %v1183_v16  ;;  %v784_v40 = vmul.f32 0.5, %v783_v11  ;;  %v3713_v15 = vpop.eup %1861  ;;  %v750_v23 = vsel %vm749_vm7, %v3637_v50, %v746_v55  ;;  %v1674_v10 = vadd.f32 %v1673_v47, %v1354_v41 }
 0x170   :  { %v1173_v35 = vsub.f32 1.5, %v1172_v17  ;;  %v1192_v56 = vmul.f32 0.5, %v1191_v54  ;;  %v1242_v57 = vmul.f32 %v1912_v0, %v750_v23  ;;  %v766_v8 = vmul.f32 %v3669_v21, %v765_v18  ;;  %v1918_v17 = vld [vmem:[#allocation2 + $0x128] sm:$0xff] }
 0x171   :  { %vm1196_vm10 = vweird.f32 %v3691_v1  ;;  %v785_v53 = vsub.f32 1.5, %v784_v40  ;;  %v773_v36 = vmul.f32 %v3703_v24, %v772_v29  ;;  %v1188_v52 = vsel %vm3721_vm9, %v3648_v63, %v1184_v22  ;;  %v1913_v63 = vld [vmem:[#allocation5 + $0x110] sm:$0xff]  ;;  %v1919_v22 = vld [vmem:[#allocation5 + $0x128] sm:$0xff] }
 0x172   :  { %v1174_v27 = vmul.f32 %v3677_v37, %v1173_v35  ;;  %v1193_v48 = vsub.f32 1.5, %v1192_v56  ;;  %v1318_v4 = vsub.f32 %v1242_v57, %v1280_v6  ;;  %vm788_vm1 = vweird.f32 %v3684_v43  ;;  %vm3756_vm13 = vmor %vm1195_vm2, %vm1196_vm10 }
 0x173   :  { %v1200_v3 = vmul.f32 %v3713_v15, %v3667_v20  ;;  %v770_v50 = vsel %vm3731_vm11, %v3669_v21, %v766_v8  ;;  %v774_v60 = vmul.f32 0.5, %v773_v36  ;;  %vm778_vm14 = vweird.f32 %v3703_v24  ;;  %vm3772_vm15 = vmor %vm787_vm5, %vm788_vm1 }
 0x174   :  { %v1178_v47 = vsel %vm1177_vm12, %v3677_v37, %v1174_v27  ;;  %v1194_v42 = vmul.f32 %v3691_v1, %v1193_v48  ;;  %v1413_v12 = vlaneseq  ;;  %v1282_v21 = vmul.f32 %v1914_v45, %v1188_v52 }
 0x175   :  { %v1281_v9 = vmul.f32 %v1913_v63, %v1178_v47  ;;  %v1201_v30 = vmul.f32 %v3713_v15, %v1200_v3  ;;  %v786_v28 = vmul.f32 %v3684_v43, %v785_v53  ;;  %v775_v37 = vsub.f32 1.5, %v774_v60 }
 0x176   :  { %v1198_v34 = vsel %vm3756_vm13, %v3691_v1, %v1194_v42  ;;  %v1356_v41 = vmul.f32 %v1318_v4, %v1318_v4  ;;  %v1244_v2 = vmul.f32 %v1915_v13, %v770_v50  ;;  %v1675_v62 = vadd.f32 %v1674_v10, %v3650_v59 }
 0x177   :  { %v1319_v38 = vsub.f32 %v3679_v33, %v1281_v9  ;;  %v1202_v31 = vmul.f32 0.5, %v1201_v30  ;;  %v1283_v6 = vmul.f32 %v1916_v25, %v1198_v34  ;;  %v776_v1 = vmul.f32 %v3703_v24, %v775_v37 }
 0x178   :  { %vm777_vm0 = vweird.f32 %v3657_v5  ;;  %vm1206_vm3 = vweird.f32 %v3713_v15  ;;  %v1414_v59 = vshrl.u32 %v1413_v12, 7  ;;  %v790_v51 = vsel %vm3772_vm15, %v3684_v43, %v786_v28 }
 0x179   :  { %v1357_v14 = vmul.f32 %v1319_v38, %v1319_v38  ;;  %vm779_vm2 = vmor %vm777_vm0, %vm778_vm14  ;;  %v1203_v33 = vsub.f32 1.5, %v1202_v31  ;;  %vm1205_vm4 = vweird.f32 %v3667_v20  ;;  %v1676_v32 = vadd.f32 %v1675_v62, %v1356_v41 }
 0x17a   :  { %v780_v19 = vsel %vm779_vm2, %v3703_v24, %v776_v1  ;;  %v1320_v49 = vsub.f32 %v1244_v2, %v1282_v21  ;;  %vm1207_vm5 = vmor %vm1205_vm4, %vm1206_vm3  ;;  %v1451_v55 = vadd.s32 296, %v1414_v59  ;;  %v1246_v54 = vmul.f32 %v1918_v17, %v790_v51 }
 0x17b   :  { %v1245_v5 = vmul.f32 %v1917_v58, %v780_v19  ;;  %v1204_v46 = vmul.f32 %v3713_v15, %v1203_v33  ;;  %v1677_v16 = vadd.f32 %v1676_v32, %v1357_v14 }
 0x17c   :  { %v1358_v18 = vmul.f32 %v1320_v49, %v1320_v49  ;;  %vm1528_vm6 = vcmp.lt.s32.totalorder %v1451_v55, 300 }
 0x17d   :  { %v1321_v61 = vsub.f32 %v1245_v5, %v1283_v6  ;;  %v1208_v11 = vsel %vm1207_vm5, %v3713_v15, %v1204_v46 }
 0x17e   :  { %v1284_v43 = vmul.f32 %v1919_v22, %v1208_v11  ;;  %v1678_v20 = vadd.f32 %v1677_v16, %v1358_v18 }
 0x17f   :  { %v1359_v24 = vmul.f32 %v1321_v61, %v1321_v61 }
 0x180   :  { %v1322_v40 = vsub.f32 %v1246_v54, %v1284_v43 }
 0x181   :  { %v1679_v23 = vadd.f32 %v1678_v20, %v1359_v24 }
 0x182   :  { %v1360_v29 = vmul.f32 %v1322_v40, %v1322_v40 }
 0x184   :  { %v1642_v35 = vsel %vm1528_vm6, %v1360_v29, 0.0 }
 0x185   :  { %v1680_v15 = vadd.f32 %v1679_v23, %v1642_v35 }
 0x187   :  { %1682 = vst [vmem:[#allocation7] sm:$0xff] %v1680_v15 }
 0x188   :  { %1693 = dma.vmem_to_hbm [thread:$0]  %s1689_s1, 128, %s1691_s23, [#allocation4]  }
 0x189   :  { %1996 = dma.done.wait [#allocation4], 128  }
 0x18a   :  { %1997 = vsyncadd [#allocation4], 4294967168 }
 0x18b   :  { %1698 = vsyncpa [#allocation3], 1 }
 0x18c   :  { %1699 = vsyncpa [#allocation6], 1 }
 0x18d   :  { %1700 = vsyncpa [#allocation4], 1 }

</bundles_post_ra>
